<compile_context>
chip_gen: v7x
topology: tpu7x:2x2x1
jax: 0.10.0
libtpu: 0.0.40
codegen_flags: <defaults>
</compile_context>

<pallas_src>
import jax
import jax.numpy as jnp
from jax.experimental import pallas as pl
from jax.experimental.pallas import tpu as pltpu

_HI = jax.lax.Precision.HIGHEST


def _align8(n):
    return -(-n // 8) * 8


def _align128(n):
    return -(-n // 128) * 128


def _pick_batch_tile(batch):
    """Largest power-of-two tile (<=512) that divides the batch; else whole batch."""
    for cand in (512, 256, 128, 64, 32, 16, 8):
        if batch % cand == 0:
            return cand
    return batch


def _make_decoder_rnn_kernel(seq_len, feat, hidden, out_dim, offsets):
    """Builds the kernel closure for static (T, F, H, D2) and slab row offsets."""
    T, F, H, D2 = seq_len, feat, hidden, out_dim
    G = 4 * H
    o_wih, o_whh, o_b, o_weff, o_beff = offsets

    def kernel(x_ref, w_ref, out_ref):
        # x_ref:   (TB, T, F)   batch tile of input trajectories
        # w_ref:   (rows, cols) packed weight slab (single DMA, VMEM-resident)
        # out_ref: (TB, D2)
        TB = x_ref.shape[0]
        x = x_ref[...].astype(jnp.float32)                       # cast in-kernel

        # Static slices of the packed slab (all row offsets are 8-aligned).
        wih = w_ref[o_wih:o_wih + F, 0:G]                        # (F, 4H)  = lstm.weight_ih_l0^T
        whh = w_ref[o_whh:o_whh + H, 0:G]                        # (H, 4H)  = lstm.weight_hh_l0^T
        b = w_ref[o_b:o_b + 1, 0:G]                              # (1, 4H)  = b_ih + b_hh
        weff = w_ref[o_weff:o_weff + H, 0:D2]                    # (H, D2)  = w1^T @ w2^T
        beff = w_ref[o_beff:o_beff + 1, 0:D2]                    # (1, D2)  = b1 @ w2^T + b2

        # Input projection for every timestep in one MXU call (not on the
        # serial h/c dependence chain).
        gx = jnp.dot(x.reshape(TB * T, F), wih,
                     precision=_HI,
                     preferred_element_type=jnp.float32) + b     # (TB*T, 4H)
        gx = gx.reshape(TB, T, G)

        h = jnp.zeros((TB, H), jnp.float32)
        c = jnp.zeros((TB, H), jnp.float32)

        # T is small and static -> fully unrolled recurrence with static slices.
        # (Switch to lax.fori_loop with small unroll if T/H ever grow enough to
        #  exceed the 64-vreg file.)
        for t in range(T):
            gates = gx[:, t, :] + jnp.dot(h, whh,
                                          precision=_HI,
                                          preferred_element_type=jnp.float32)
            # One full-width sigmoid over all 4H lanes + one tanh for g:
            # 2 EUP pushes per step instead of 4.
            sg = jax.nn.sigmoid(gates)                           # (TB, 4H)
            g_g = jnp.tanh(gates[:, 2 * H:3 * H])                # (TB, H)
            i_g = sg[:, 0 * H:1 * H]
            f_g = sg[:, 1 * H:2 * H]
            o_g = sg[:, 3 * H:4 * H]
            c = f_g * c + i_g * g_g
            h = o_g * jnp.tanh(c)

        # Folded out2(out1(h)) -- single affine on the final hidden state.
        y = jnp.dot(h, weff, precision=_HI,
                    preferred_element_type=jnp.float32) + beff   # (TB, D2)
        out_ref[...] = y.astype(out_ref.dtype)

    return kernel


def decoder_rnn_forward(input_traj, packed):
    """input_traj: (batch, seq, feat).  Returns (batch, 4*5) float32."""
    B, T, F = input_traj.shape
    assert T >= 1, "empty sequence not supported (matches torch LSTM)"
    assert F == packed["feat"], (F, packed["feat"])
    H, D2 = packed["hidden"], packed["out_dim"]
    slab = packed["slab"]

    kernel = _make_decoder_rnn_kernel(T, F, H, D2, packed["offsets"])

    tb = _pick_batch_tile(B)
    grid = (B // tb,)

    return pl.pallas_call(
        kernel,
        out_shape=jax.ShapeDtypeStruct((B, D2), jnp.float32),
        grid=grid,
        in_specs=[
            pl.BlockSpec((tb, T, F), lambda i: (i, 0, 0)),
            # Constant block index -> weight slab fetched once, VMEM-resident.
            pl.BlockSpec(slab.shape, lambda i: (0, 0)),
        ],
        out_specs=pl.BlockSpec((tb, D2), lambda i: (i, 0)),
        compiler_params=pltpu.CompilerParams(
            dimension_semantics=("parallel",)),
    )(input_traj, slab)


# ----------------------------------------------------------------------------
# Parameter construction (PyTorch layout), kernel-layout packing, reference.
# ----------------------------------------------------------------------------

def init_torch_params(key, num_hidden=32, input_size=11):
    """Raw PyTorch-layout params, U(-1/sqrt(fan_in), 1/sqrt(fan_in)) like torch."""
    H, F = num_hidden, input_size
    keys = jax.random.split(key, 8)
    u = lambda kk, shape, s: jax.random.uniform(kk, shape, jnp.float32, -s, s)
    k = 1.0 / jnp.sqrt(jnp.float32(H))
    w_ih = u(keys[0], (4 * H, F), k)          # lstm.weight_ih_l0
    w_hh = u(keys[1], (4 * H, H), k)          # lstm.weight_hh_l0
    b_ih = u(keys[2], (4 * H,), k)            # lstm.bias_ih_l0
    b_hh = u(keys[3], (4 * H,), k)            # lstm.bias_hh_l0
    k1 = 1.0 / jnp.sqrt(jnp.float32(H))
    w1 = u(keys[4], (64, H), k1)              # out1.weight
    b1 = u(keys[5], (64,), k1)                # out1.bias
    k2 = 1.0 / jnp.sqrt(jnp.float32(64))
    w2 = u(keys[6], (4 * 5, 64), k2)          # out2.weight
    b2 = u(keys[7], (4 * 5,), k2)             # out2.bias
    return dict(w_ih=w_ih, w_hh=w_hh, b_ih=b_ih, b_hh=b_hh,
                w1=w1, b1=b1, w2=w2, b2=b2)


def prep_kernel_params(tp):
    """Pack all weights/biases into one lane-dense f32 slab (single DMA).

    Also folds (a) the two LSTM biases and (b) out1/out2 (no nonlinearity
    between them in the torch source) into a single affine.
    """
    F = tp["w_ih"].shape[1]
    H = tp["w_hh"].shape[1]
    D2 = tp["w2"].shape[0]
    G = 4 * H

    # Fold out2 o out1: (h @ w1^T + b1) @ w2^T + b2 = h @ W_eff + b_eff
    w_eff = jnp.dot(tp["w1"].T, tp["w2"].T, precision=_HI)               # (H, D2)
    b_eff = jnp.dot(tp["b1"][None, :], tp["w2"].T, precision=_HI)[0] + tp["b2"]

    o_wih = 0
    o_whh = _align8(F)
    o_b = o_whh + _align8(H)
    o_weff = o_b + 8
    o_beff = o_weff + _align8(H)
    rows = o_beff + 8
    cols = _align128(max(G, D2))

    slab = jnp.zeros((rows, cols), jnp.float32)
    slab = slab.at[o_wih:o_wih + F, 0:G].set(tp["w_ih"].T)               # (F, 4H)
    slab = slab.at[o_whh:o_whh + H, 0:G].set(tp["w_hh"].T)               # (H, 4H)
    slab = slab.at[o_b, 0:G].set(tp["b_ih"] + tp["b_hh"])                # (4H,)
    slab = slab.at[o_weff:o_weff + H, 0:D2].set(w_eff)                   # (H, D2)
    slab = slab.at[o_beff, 0:D2].set(b_eff)                              # (D2,)

    return dict(slab=slab, feat=F, hidden=H, out_dim=D2,
                offsets=(o_wih, o_whh, o_b, o_weff, o_beff))


def _reference_torch_semantics(input_traj, tp):
    """Pure-JAX replica of DecoderRNN.forward using raw torch-layout params."""
    x = jnp.transpose(input_traj, (1, 0, 2)).astype(jnp.float32)  # (T, B, F)
    T, B, _ = x.shape
    H = tp["w_hh"].shape[1]
    h = jnp.zeros((B, H), jnp.float32)
    c = jnp.zeros((B, H), jnp.float32)
    for t in range(T):
        g = (jnp.dot(x[t], tp["w_ih"].T, precision=_HI)
             + jnp.dot(h, tp["w_hh"].T, precision=_HI)
             + tp["b_ih"] + tp["b_hh"])
        i = jax.nn.sigmoid(g[:, 0 * H:1 * H])
        f = jax.nn.sigmoid(g[:, 1 * H:2 * H])
        gg = jnp.tanh(g[:, 2 * H:3 * H])
        o = jax.nn.sigmoid(g[:, 3 * H:4 * H])
        c = f * c + i * gg
        h = o * jnp.tanh(c)
    y1 = jnp.dot(h, tp["w1"].T, precision=_HI) + tp["b1"]
    return jnp.dot(y1, tp["w2"].T, precision=_HI) + tp["b2"]


if __name__ == "__main__":
    B, T, F, H = 2, 8, 11, 32
    key = jax.random.PRNGKey(0)
    k_in, k_par = jax.random.split(key)
    input_traj = jax.random.normal(k_in, (B, T, F), jnp.float32)

    torch_params = init_torch_params(k_par, num_hidden=H, input_size=F)
    packed = prep_kernel_params(torch_params)

    out = jax.block_until_ready(decoder_rnn_forward(input_traj, packed))
    ref = _reference_torch_semantics(input_traj, torch_params)

    assert out.shape == (B, 20), out.shape
    err = float(jnp.max(jnp.abs(out - ref)))
    assert err < 2e-4, err
    print("KERNEL_OK")
</pallas_src>

<mosaic_0001>
module attributes {stable_mosaic.version = 11 : i64} {
  func.func @kernel(%arg0: i32, %arg1: memref<2x8x11xf32, #tpu.memory_space<vmem>>, %arg2: memref<96x128xf32, #tpu.memory_space<vmem>>, %arg3: memref<2x20xf32, #tpu.memory_space<vmem>>) attributes {dimension_semantics = [#tpu.dimension_semantics<parallel>], iteration_bounds = array<i64: 1>, scalar_prefetch = 0 : i64, scratch_operands = 0 : i64, tpu.core_type = #tpu.core_type<tc>, window_params = [{transform_indices = @transform_0, window_bounds = array<i64: 2, 8, 11>}, {pipeline_mode = #tpu.pipeline_mode<synchronous>, transform_indices = @transform_1, window_bounds = array<i64: 96, 128>}, {transform_indices = @transform_2, window_bounds = array<i64: 2, 20>}]} {
    %c0 = arith.constant 0 : index
    %c0_0 = arith.constant 0 : index
    %c0_1 = arith.constant 0 : index
    %0 = vector.load %arg1[%c0, %c0_0, %c0_1] : memref<2x8x11xf32, #tpu.memory_space<vmem>>, vector<2x8x11xf32>
    %c0_2 = arith.constant 0 : index
    %c0_3 = arith.constant 0 : index
    %1 = vector.load %arg2[%c0_2, %c0_3] : memref<96x128xf32, #tpu.memory_space<vmem>>, vector<11x128xf32>
    %c16 = arith.constant 16 : index
    %c0_4 = arith.constant 0 : index
    %2 = vector.load %arg2[%c16, %c0_4] : memref<96x128xf32, #tpu.memory_space<vmem>>, vector<32x128xf32>
    %c48 = arith.constant 48 : index
    %c0_5 = arith.constant 0 : index
    %3 = vector.load %arg2[%c48, %c0_5] : memref<96x128xf32, #tpu.memory_space<vmem>>, vector<1x128xf32>
    %c56 = arith.constant 56 : index
    %c0_6 = arith.constant 0 : index
    %4 = vector.load %arg2[%c56, %c0_6] : memref<96x128xf32, #tpu.memory_space<vmem>>, vector<32x20xf32>
    %c88 = arith.constant 88 : index
    %c0_7 = arith.constant 0 : index
    %5 = vector.load %arg2[%c88, %c0_7] : memref<96x128xf32, #tpu.memory_space<vmem>>, vector<1x20xf32>
    %6 = vector.shape_cast %0 : vector<2x8x11xf32> to vector<16x11xf32>
    %cst = arith.constant dense<0.000000e+00> : vector<16x128xf32>
    %7 = tpu.matmul %6, %1, %cst {dimension_numbers = #tpu.dot_dimension_numbers<[1], [0], [0], [1], [0, 0, 1, 1], [], []>, precision = #tpu.contract_precision<fp32>} : vector<16x11xf32>, vector<11x128xf32>, vector<16x128xf32> -> vector<16x128xf32>
    %8 = vector.broadcast %3 : vector<1x128xf32> to vector<16x128xf32>
    %9 = arith.addf %7, %8 : vector<16x128xf32>
    %10 = vector.shape_cast %9 : vector<16x128xf32> to vector<2x8x128xf32>
    %cst_8 = arith.constant 0.000000e+00 : f32
    %11 = vector.broadcast %cst_8 : f32 to vector<2x32xf32>
    %cst_9 = arith.constant 0.000000e+00 : f32
    %12 = vector.broadcast %cst_9 : f32 to vector<2x32xf32>
    %13 = vector.extract_strided_slice %10 {offsets = [0, 0, 0], sizes = [2, 1, 128], strides = [1, 1, 1]} : vector<2x8x128xf32> to vector<2x1x128xf32>
    %14 = vector.shape_cast %13 : vector<2x1x128xf32> to vector<2x128xf32>
    %cst_10 = arith.constant dense<0.000000e+00> : vector<2x128xf32>
    %15 = tpu.matmul %11, %2, %cst_10 {dimension_numbers = #tpu.dot_dimension_numbers<[1], [0], [0], [1], [0, 0, 1, 1], [], []>, precision = #tpu.contract_precision<fp32>} : vector<2x32xf32>, vector<32x128xf32>, vector<2x128xf32> -> vector<2x128xf32>
    %16 = arith.addf %14, %15 : vector<2x128xf32>
    %17 = arith.negf %16 : vector<2x128xf32>
    %18 = math.exp %17 : vector<2x128xf32>
    %cst_11 = arith.constant 1.000000e+00 : f32
    %19 = vector.broadcast %cst_11 : f32 to vector<2x128xf32>
    %20 = arith.addf %19, %18 : vector<2x128xf32>
    %21 = arith.divf %19, %20 : vector<2x128xf32>
    %22 = vector.extract_strided_slice %16 {offsets = [0, 64], sizes = [2, 32], strides = [1, 1]} : vector<2x128xf32> to vector<2x32xf32>
    %23 = math.tanh %22 : vector<2x32xf32>
    %24 = vector.extract_strided_slice %21 {offsets = [0, 0], sizes = [2, 32], strides = [1, 1]} : vector<2x128xf32> to vector<2x32xf32>
    %25 = vector.extract_strided_slice %21 {offsets = [0, 32], sizes = [2, 32], strides = [1, 1]} : vector<2x128xf32> to vector<2x32xf32>
    %26 = vector.extract_strided_slice %21 {offsets = [0, 96], sizes = [2, 32], strides = [1, 1]} : vector<2x128xf32> to vector<2x32xf32>
    %27 = arith.mulf %25, %12 : vector<2x32xf32>
    %28 = arith.mulf %24, %23 : vector<2x32xf32>
    %29 = arith.addf %27, %28 : vector<2x32xf32>
    %30 = math.tanh %29 : vector<2x32xf32>
    %31 = arith.mulf %26, %30 : vector<2x32xf32>
    %32 = vector.extract_strided_slice %10 {offsets = [0, 1, 0], sizes = [2, 1, 128], strides = [1, 1, 1]} : vector<2x8x128xf32> to vector<2x1x128xf32>
    %33 = vector.shape_cast %32 : vector<2x1x128xf32> to vector<2x128xf32>
    %cst_12 = arith.constant dense<0.000000e+00> : vector<2x128xf32>
    %34 = tpu.matmul %31, %2, %cst_12 {dimension_numbers = #tpu.dot_dimension_numbers<[1], [0], [0], [1], [0, 0, 1, 1], [], []>, precision = #tpu.contract_precision<fp32>} : vector<2x32xf32>, vector<32x128xf32>, vector<2x128xf32> -> vector<2x128xf32>
    %35 = arith.addf %33, %34 : vector<2x128xf32>
    %36 = arith.negf %35 : vector<2x128xf32>
    %37 = math.exp %36 : vector<2x128xf32>
    %cst_13 = arith.constant 1.000000e+00 : f32
    %38 = vector.broadcast %cst_13 : f32 to vector<2x128xf32>
    %39 = arith.addf %38, %37 : vector<2x128xf32>
    %40 = arith.divf %38, %39 : vector<2x128xf32>
    %41 = vector.extract_strided_slice %35 {offsets = [0, 64], sizes = [2, 32], strides = [1, 1]} : vector<2x128xf32> to vector<2x32xf32>
    %42 = math.tanh %41 : vector<2x32xf32>
    %43 = vector.extract_strided_slice %40 {offsets = [0, 0], sizes = [2, 32], strides = [1, 1]} : vector<2x128xf32> to vector<2x32xf32>
    %44 = vector.extract_strided_slice %40 {offsets = [0, 32], sizes = [2, 32], strides = [1, 1]} : vector<2x128xf32> to vector<2x32xf32>
    %45 = vector.extract_strided_slice %40 {offsets = [0, 96], sizes = [2, 32], strides = [1, 1]} : vector<2x128xf32> to vector<2x32xf32>
    %46 = arith.mulf %44, %29 : vector<2x32xf32>
    %47 = arith.mulf %43, %42 : vector<2x32xf32>
    %48 = arith.addf %46, %47 : vector<2x32xf32>
    %49 = math.tanh %48 : vector<2x32xf32>
    %50 = arith.mulf %45, %49 : vector<2x32xf32>
    %51 = vector.extract_strided_slice %10 {offsets = [0, 2, 0], sizes = [2, 1, 128], strides = [1, 1, 1]} : vector<2x8x128xf32> to vector<2x1x128xf32>
    %52 = vector.shape_cast %51 : vector<2x1x128xf32> to vector<2x128xf32>
    %cst_14 = arith.constant dense<0.000000e+00> : vector<2x128xf32>
    %53 = tpu.matmul %50, %2, %cst_14 {dimension_numbers = #tpu.dot_dimension_numbers<[1], [0], [0], [1], [0, 0, 1, 1], [], []>, precision = #tpu.contract_precision<fp32>} : vector<2x32xf32>, vector<32x128xf32>, vector<2x128xf32> -> vector<2x128xf32>
    %54 = arith.addf %52, %53 : vector<2x128xf32>
    %55 = arith.negf %54 : vector<2x128xf32>
    %56 = math.exp %55 : vector<2x128xf32>
    %cst_15 = arith.constant 1.000000e+00 : f32
    %57 = vector.broadcast %cst_15 : f32 to vector<2x128xf32>
    %58 = arith.addf %57, %56 : vector<2x128xf32>
    %59 = arith.divf %57, %58 : vector<2x128xf32>
    %60 = vector.extract_strided_slice %54 {offsets = [0, 64], sizes = [2, 32], strides = [1, 1]} : vector<2x128xf32> to vector<2x32xf32>
    %61 = math.tanh %60 : vector<2x32xf32>
    %62 = vector.extract_strided_slice %59 {offsets = [0, 0], sizes = [2, 32], strides = [1, 1]} : vector<2x128xf32> to vector<2x32xf32>
    %63 = vector.extract_strided_slice %59 {offsets = [0, 32], sizes = [2, 32], strides = [1, 1]} : vector<2x128xf32> to vector<2x32xf32>
    %64 = vector.extract_strided_slice %59 {offsets = [0, 96], sizes = [2, 32], strides = [1, 1]} : vector<2x128xf32> to vector<2x32xf32>
    %65 = arith.mulf %63, %48 : vector<2x32xf32>
    %66 = arith.mulf %62, %61 : vector<2x32xf32>
    %67 = arith.addf %65, %66 : vector<2x32xf32>
    %68 = math.tanh %67 : vector<2x32xf32>
    %69 = arith.mulf %64, %68 : vector<2x32xf32>
    %70 = vector.extract_strided_slice %10 {offsets = [0, 3, 0], sizes = [2, 1, 128], strides = [1, 1, 1]} : vector<2x8x128xf32> to vector<2x1x128xf32>
    %71 = vector.shape_cast %70 : vector<2x1x128xf32> to vector<2x128xf32>
    %cst_16 = arith.constant dense<0.000000e+00> : vector<2x128xf32>
    %72 = tpu.matmul %69, %2, %cst_16 {dimension_numbers = #tpu.dot_dimension_numbers<[1], [0], [0], [1], [0, 0, 1, 1], [], []>, precision = #tpu.contract_precision<fp32>} : vector<2x32xf32>, vector<32x128xf32>, vector<2x128xf32> -> vector<2x128xf32>
    %73 = arith.addf %71, %72 : vector<2x128xf32>
    %74 = arith.negf %73 : vector<2x128xf32>
    %75 = math.exp %74 : vector<2x128xf32>
    %cst_17 = arith.constant 1.000000e+00 : f32
    %76 = vector.broadcast %cst_17 : f32 to vector<2x128xf32>
    %77 = arith.addf %76, %75 : vector<2x128xf32>
    %78 = arith.divf %76, %77 : vector<2x128xf32>
    %79 = vector.extract_strided_slice %73 {offsets = [0, 64], sizes = [2, 32], strides = [1, 1]} : vector<2x128xf32> to vector<2x32xf32>
    %80 = math.tanh %79 : vector<2x32xf32>
    %81 = vector.extract_strided_slice %78 {offsets = [0, 0], sizes = [2, 32], strides = [1, 1]} : vector<2x128xf32> to vector<2x32xf32>
    %82 = vector.extract_strided_slice %78 {offsets = [0, 32], sizes = [2, 32], strides = [1, 1]} : vector<2x128xf32> to vector<2x32xf32>
    %83 = vector.extract_strided_slice %78 {offsets = [0, 96], sizes = [2, 32], strides = [1, 1]} : vector<2x128xf32> to vector<2x32xf32>
    %84 = arith.mulf %82, %67 : vector<2x32xf32>
    %85 = arith.mulf %81, %80 : vector<2x32xf32>
    %86 = arith.addf %84, %85 : vector<2x32xf32>
    %87 = math.tanh %86 : vector<2x32xf32>
    %88 = arith.mulf %83, %87 : vector<2x32xf32>
    %89 = vector.extract_strided_slice %10 {offsets = [0, 4, 0], sizes = [2, 1, 128], strides = [1, 1, 1]} : vector<2x8x128xf32> to vector<2x1x128xf32>
    %90 = vector.shape_cast %89 : vector<2x1x128xf32> to vector<2x128xf32>
    %cst_18 = arith.constant dense<0.000000e+00> : vector<2x128xf32>
    %91 = tpu.matmul %88, %2, %cst_18 {dimension_numbers = #tpu.dot_dimension_numbers<[1], [0], [0], [1], [0, 0, 1, 1], [], []>, precision = #tpu.contract_precision<fp32>} : vector<2x32xf32>, vector<32x128xf32>, vector<2x128xf32> -> vector<2x128xf32>
    %92 = arith.addf %90, %91 : vector<2x128xf32>
    %93 = arith.negf %92 : vector<2x128xf32>
    %94 = math.exp %93 : vector<2x128xf32>
    %cst_19 = arith.constant 1.000000e+00 : f32
    %95 = vector.broadcast %cst_19 : f32 to vector<2x128xf32>
    %96 = arith.addf %95, %94 : vector<2x128xf32>
    %97 = arith.divf %95, %96 : vector<2x128xf32>
    %98 = vector.extract_strided_slice %92 {offsets = [0, 64], sizes = [2, 32], strides = [1, 1]} : vector<2x128xf32> to vector<2x32xf32>
    %99 = math.tanh %98 : vector<2x32xf32>
    %100 = vector.extract_strided_slice %97 {offsets = [0, 0], sizes = [2, 32], strides = [1, 1]} : vector<2x128xf32> to vector<2x32xf32>
    %101 = vector.extract_strided_slice %97 {offsets = [0, 32], sizes = [2, 32], strides = [1, 1]} : vector<2x128xf32> to vector<2x32xf32>
    %102 = vector.extract_strided_slice %97 {offsets = [0, 96], sizes = [2, 32], strides = [1, 1]} : vector<2x128xf32> to vector<2x32xf32>
    %103 = arith.mulf %101, %86 : vector<2x32xf32>
    %104 = arith.mulf %100, %99 : vector<2x32xf32>
    %105 = arith.addf %103, %104 : vector<2x32xf32>
    %106 = math.tanh %105 : vector<2x32xf32>
    %107 = arith.mulf %102, %106 : vector<2x32xf32>
    %108 = vector.extract_strided_slice %10 {offsets = [0, 5, 0], sizes = [2, 1, 128], strides = [1, 1, 1]} : vector<2x8x128xf32> to vector<2x1x128xf32>
    %109 = vector.shape_cast %108 : vector<2x1x128xf32> to vector<2x128xf32>
    %cst_20 = arith.constant dense<0.000000e+00> : vector<2x128xf32>
    %110 = tpu.matmul %107, %2, %cst_20 {dimension_numbers = #tpu.dot_dimension_numbers<[1], [0], [0], [1], [0, 0, 1, 1], [], []>, precision = #tpu.contract_precision<fp32>} : vector<2x32xf32>, vector<32x128xf32>, vector<2x128xf32> -> vector<2x128xf32>
    %111 = arith.addf %109, %110 : vector<2x128xf32>
    %112 = arith.negf %111 : vector<2x128xf32>
    %113 = math.exp %112 : vector<2x128xf32>
    %cst_21 = arith.constant 1.000000e+00 : f32
    %114 = vector.broadcast %cst_21 : f32 to vector<2x128xf32>
    %115 = arith.addf %114, %113 : vector<2x128xf32>
    %116 = arith.divf %114, %115 : vector<2x128xf32>
    %117 = vector.extract_strided_slice %111 {offsets = [0, 64], sizes = [2, 32], strides = [1, 1]} : vector<2x128xf32> to vector<2x32xf32>
    %118 = math.tanh %117 : vector<2x32xf32>
    %119 = vector.extract_strided_slice %116 {offsets = [0, 0], sizes = [2, 32], strides = [1, 1]} : vector<2x128xf32> to vector<2x32xf32>
    %120 = vector.extract_strided_slice %116 {offsets = [0, 32], sizes = [2, 32], strides = [1, 1]} : vector<2x128xf32> to vector<2x32xf32>
    %121 = vector.extract_strided_slice %116 {offsets = [0, 96], sizes = [2, 32], strides = [1, 1]} : vector<2x128xf32> to vector<2x32xf32>
    %122 = arith.mulf %120, %105 : vector<2x32xf32>
    %123 = arith.mulf %119, %118 : vector<2x32xf32>
    %124 = arith.addf %122, %123 : vector<2x32xf32>
    %125 = math.tanh %124 : vector<2x32xf32>
    %126 = arith.mulf %121, %125 : vector<2x32xf32>
    %127 = vector.extract_strided_slice %10 {offsets = [0, 6, 0], sizes = [2, 1, 128], strides = [1, 1, 1]} : vector<2x8x128xf32> to vector<2x1x128xf32>
    %128 = vector.shape_cast %127 : vector<2x1x128xf32> to vector<2x128xf32>
    %cst_22 = arith.constant dense<0.000000e+00> : vector<2x128xf32>
    %129 = tpu.matmul %126, %2, %cst_22 {dimension_numbers = #tpu.dot_dimension_numbers<[1], [0], [0], [1], [0, 0, 1, 1], [], []>, precision = #tpu.contract_precision<fp32>} : vector<2x32xf32>, vector<32x128xf32>, vector<2x128xf32> -> vector<2x128xf32>
    %130 = arith.addf %128, %129 : vector<2x128xf32>
    %131 = arith.negf %130 : vector<2x128xf32>
    %132 = math.exp %131 : vector<2x128xf32>
    %cst_23 = arith.constant 1.000000e+00 : f32
    %133 = vector.broadcast %cst_23 : f32 to vector<2x128xf32>
    %134 = arith.addf %133, %132 : vector<2x128xf32>
    %135 = arith.divf %133, %134 : vector<2x128xf32>
    %136 = vector.extract_strided_slice %130 {offsets = [0, 64], sizes = [2, 32], strides = [1, 1]} : vector<2x128xf32> to vector<2x32xf32>
    %137 = math.tanh %136 : vector<2x32xf32>
    %138 = vector.extract_strided_slice %135 {offsets = [0, 0], sizes = [2, 32], strides = [1, 1]} : vector<2x128xf32> to vector<2x32xf32>
    %139 = vector.extract_strided_slice %135 {offsets = [0, 32], sizes = [2, 32], strides = [1, 1]} : vector<2x128xf32> to vector<2x32xf32>
    %140 = vector.extract_strided_slice %135 {offsets = [0, 96], sizes = [2, 32], strides = [1, 1]} : vector<2x128xf32> to vector<2x32xf32>
    %141 = arith.mulf %139, %124 : vector<2x32xf32>
    %142 = arith.mulf %138, %137 : vector<2x32xf32>
    %143 = arith.addf %141, %142 : vector<2x32xf32>
    %144 = math.tanh %143 : vector<2x32xf32>
    %145 = arith.mulf %140, %144 : vector<2x32xf32>
    %146 = vector.extract_strided_slice %10 {offsets = [0, 7, 0], sizes = [2, 1, 128], strides = [1, 1, 1]} : vector<2x8x128xf32> to vector<2x1x128xf32>
    %147 = vector.shape_cast %146 : vector<2x1x128xf32> to vector<2x128xf32>
    %cst_24 = arith.constant dense<0.000000e+00> : vector<2x128xf32>
    %148 = tpu.matmul %145, %2, %cst_24 {dimension_numbers = #tpu.dot_dimension_numbers<[1], [0], [0], [1], [0, 0, 1, 1], [], []>, precision = #tpu.contract_precision<fp32>} : vector<2x32xf32>, vector<32x128xf32>, vector<2x128xf32> -> vector<2x128xf32>
    %149 = arith.addf %147, %148 : vector<2x128xf32>
    %150 = arith.negf %149 : vector<2x128xf32>
    %151 = math.exp %150 : vector<2x128xf32>
    %cst_25 = arith.constant 1.000000e+00 : f32
    %152 = vector.broadcast %cst_25 : f32 to vector<2x128xf32>
    %153 = arith.addf %152, %151 : vector<2x128xf32>
    %154 = arith.divf %152, %153 : vector<2x128xf32>
    %155 = vector.extract_strided_slice %149 {offsets = [0, 64], sizes = [2, 32], strides = [1, 1]} : vector<2x128xf32> to vector<2x32xf32>
    %156 = math.tanh %155 : vector<2x32xf32>
    %157 = vector.extract_strided_slice %154 {offsets = [0, 0], sizes = [2, 32], strides = [1, 1]} : vector<2x128xf32> to vector<2x32xf32>
    %158 = vector.extract_strided_slice %154 {offsets = [0, 32], sizes = [2, 32], strides = [1, 1]} : vector<2x128xf32> to vector<2x32xf32>
    %159 = vector.extract_strided_slice %154 {offsets = [0, 96], sizes = [2, 32], strides = [1, 1]} : vector<2x128xf32> to vector<2x32xf32>
    %160 = arith.mulf %158, %143 : vector<2x32xf32>
    %161 = arith.mulf %157, %156 : vector<2x32xf32>
    %162 = arith.addf %160, %161 : vector<2x32xf32>
    %163 = math.tanh %162 : vector<2x32xf32>
    %164 = arith.mulf %159, %163 : vector<2x32xf32>
    %cst_26 = arith.constant dense<0.000000e+00> : vector<2x20xf32>
    %165 = tpu.matmul %164, %4, %cst_26 {dimension_numbers = #tpu.dot_dimension_numbers<[1], [0], [0], [1], [0, 0, 1, 1], [], []>, precision = #tpu.contract_precision<fp32>} : vector<2x32xf32>, vector<32x20xf32>, vector<2x20xf32> -> vector<2x20xf32>
    %166 = vector.broadcast %5 : vector<1x20xf32> to vector<2x20xf32>
    %167 = arith.addf %165, %166 : vector<2x20xf32>
    %c0_27 = arith.constant 0 : index
    %c0_28 = arith.constant 0 : index
    %168 = vector.load %arg3[%c0_27, %c0_28] : memref<2x20xf32, #tpu.memory_space<vmem>>, vector<2x20xf32>
    tpu.vector_store %arg3[%c0_27, %c0_28], %167 {strides = array<i32>} : memref<2x20xf32, #tpu.memory_space<vmem>>, vector<2x20xf32>,
    return
  }
  func.func @transform_0(%arg0: i32) -> (i32, i32, i32) {
    %c0_i32 = arith.constant 0 : i32
    %c0_i32_0 = arith.constant 0 : i32
    %c0_i32_1 = arith.constant 0 : i32
    return %arg0, %c0_i32, %c0_i32_0 : i32, i32, i32
  }
  func.func @transform_1(%arg0: i32) -> (i32, i32) {
    %c0_i32 = arith.constant 0 : i32
    %c0_i32_0 = arith.constant 0 : i32
    %c0_i32_1 = arith.constant 0 : i32
    return %c0_i32, %c0_i32_0 : i32, i32
  }
  func.func @transform_2(%arg0: i32) -> (i32, i32) {
    %c0_i32 = arith.constant 0 : i32
    %c0_i32_0 = arith.constant 0 : i32
    return %arg0, %c0_i32 : i32, i32
  }
}

</mosaic_0001>

<bundles_post_ra>
// kernel: tpu_custom_call.1
= control target key start
LH: loop header
LB: loop body
LE: loop exit
PB: predicated region body
PF: predicated region fallthrough
CT: control target
= control target key end

     0   :  { %7 = vsyncpa [#allocation3], 0  ;;  %s7751_s0 = inlined_call_operand.hbm [shape: f32[2,8,11], index: 0, kind: input, shape index: {}]   ;;  %s7752_s1 = inlined_call_operand.hbm [shape: f32[96,128], index: 1, kind: input, shape index: {}]   ;;  %s7753_s2 = inlined_call_operand.hbm [shape: f32[2,20], index: 2, kind: output, shape index: {}]  }
   0x1   :  { %8 = vsyncpa [#allocation6], 0 }
   0x2   :  { %9 = vsyncpa [#allocation4], 0  ;;  %s7121_s9 = smov [#allocation2]   ;;  %s7049_s13 = scalar_lea.hbm %s7751_s0, 256 }
   0x3   :  { %s15_s10 = sshll.u32 %s7121_s9, 4  ;;  %p7050_p0 = scmp.ne.s32.totalorder %s7751_s0, %s7049_s13  ;;  %s16_s10 = int_to_ptr.vmem [resolvable:$true] %s15_s10 }
   0x4   :  { %p7053_p1 = scmp.lt.u32.totalorder %s7049_s13, %s7751_s0 }
   0x6   :  { %p7055_p2 = pnand %p7053_p1, %p7050_p0 }
   0x8   :  { %7058 = shalt.err (!%p7055_p2)
}
   0x9   :  { %s7059_s18 = scalar_lea.vmem %s16_s10, 256  ;;  %p7064_p4 = scmp.lt.s32.totalorder %s16_s10, %s16_s10 }
   0xa   :  { %p7060_p3 = scmp.ne.s32.totalorder %s16_s10, %s7059_s18  ;;  %p7065_p5 = scmp.lt.s32.totalorder %s7059_s18, %s7059_s18 }
   0xc   :  { %p7066_p6 = por %p7065_p5, %p7064_p4 }
   0xe   :  { %p7067_p7 = pnand %p7066_p6, %p7060_p3 }
  0x10   :  { %7070 = shalt.err (!%p7067_p7)
}
  0x11   :  { %s7122_s19 = smov 128   ;;  %s7123_s20 = smov 8  }
  0x12   :  { %21 = dma.hbm_to_vmem [thread:$0]  %s7751_s0, 256, %s16_s10, [#allocation3], %s7122_s19, %s7122_s19, %s7123_s20  }
  0x13   :  { %s7124_s23 = smov [#allocation5]   ;;  %s7071_s27 = scalar_lea.hbm %s7752_s1, 1536 }
  0x14   :  { %s27_s24 = sshll.u32 %s7124_s23, 4  ;;  %p7072_p8 = scmp.ne.s32.totalorder %s7752_s1, %s7071_s27  ;;  %s28_s24 = int_to_ptr.vmem [resolvable:$true] %s27_s24 }
  0x15   :  { %p7075_p9 = scmp.lt.u32.totalorder %s7071_s27, %s7752_s1 }
  0x17   :  { %p7077_p10 = pnand %p7075_p9, %p7072_p8 }
  0x19   :  { %7080 = shalt.err (!%p7077_p10)
}
  0x1a   :  { %s7081_s4 = scalar_lea.vmem %s28_s24, 1536  ;;  %p7086_p12 = scmp.lt.s32.totalorder %s28_s24, %s28_s24 }
  0x1b   :  { %p7082_p11 = scmp.ne.s32.totalorder %s28_s24, %s7081_s4  ;;  %p7087_p13 = scmp.lt.s32.totalorder %s7081_s4, %s7081_s4 }
  0x1d   :  { %p7088_p0 = por %p7087_p13, %p7086_p12 }
  0x1f   :  { %p7089_p1 = pnand %p7088_p0, %p7082_p11 }
  0x21   :  { %7092 = shalt.err (!%p7089_p1)
}
  0x22   :  { %33 = dma.hbm_to_vmem [thread:$0]  %s7752_s1, 1536, %s28_s24, [#allocation6], %s7122_s19, %s7122_s19, %s7123_s20  }
  0x23   :  { %7115 = dma.done.wait [#allocation3], 256  }
  0x24   :  { %7116 = vsyncadd [#allocation3], 4294967040 }
  0x25   :  { %7117 = dma.done.wait [#allocation6], 1536  }
  0x26   :  { %7118 = vsyncadd [#allocation6], 4294965760  ;;  %v7125_v0 = vmov 0.0|0.0   ;;  %vm7126_vm0 = vmmov 0   ;;  %v7127_v1 = vmov 0.0   ;;  %vm65_vm1 = vcmask 1042432  }
  0x27   :  { %6491 = vmatprep.subr.bf16.mxu1 %v7125_v0  ;;  %5886 = vmatprep.mubr.msk.f32.mxu1 %vm7126_vm0, %v7127_v1  ;;  %vm58_vm2 = vcmask 89088   ;;  %v42_v2 = vld [vmem:[#allocation5] sm:$0xff]  ;;  %v43_v3 = vld [vmem:[#allocation5 + $0x8] sm:$0x7]  ;;  %v40_v4 = vld [vmem:[#allocation2] sm:$0xff]  ;;  %s7128_s1 = smov 64  }
  0x28   :  { %v67_v5 = vsel %vm65_vm1, %v43_v3, 0  ;;  %v70_v6 = vand.u32 4294901760, %v42_v2  ;;  %v41_v7 = vld [vmem:[#allocation2 + $0x8] sm:$0xff]  ;;  %v60_v8 = vsel %vm58_vm2, %v40_v4, 0  ;;  %v7173_v9 = vld [vmem:[#allocation5 + $0x10] sm:$0xff]  ;;  %v7180_v15 = vld [vmem:[#allocation5 + $0x20] sm:$0xff] }
  0x29   :  { %v7175_v10 = vld [vmem:[#allocation5 + $0x18] sm:$0xff]  ;;  %v73_v11 = vand.u32 4294901760, %v67_v5  ;;  %v63_v12 = vsel %vm58_vm2, %v41_v7, 0  ;;  %v7177_v13 = vand.u32 4294901760, %v60_v8  ;;  %v576_v14 = vand.u32 4294901760, %v7173_v9  ;;  %v7187_v19 = vld [vmem:[#allocation5 + $0x28] sm:$0xff] }
  0x2a   :  { %v7182_v16 = vand.u32 4294901760, %v63_v12  ;;  %v579_v17 = vand.u32 4294901760, %v7175_v10  ;;  %v7185_v18 = vsub.f32 %v42_v2, %v70_v6  ;;  %v582_v20 = vand.u32 4294901760, %v7180_v15  ;;  %v5513_v7 = vld [vmem:[#allocation5 + $0x30] ss:$0 sm:$0xff]  ;;  %s7129_s6 = smov 32  }
  0x2b   :  { %v7190_v21 = vpack.c.bf16 %v73_v11, %v70_v6  ;;  %v7193_v22 = vsub.f32 %v60_v8, %v7177_v13  ;;  %v7198_v23 = vsub.f32 %v7173_v9, %v576_v14  ;;  %v165_v24 = vsub.f32 %v67_v5, %v73_v11  ;;  %s7130_s7 = smov [#allocation7]  }
  0x2c   :  { %v7201_v25 = vsub.f32 %v63_v12, %v7182_v16  ;;  %v7206_v26 = vsub.f32 %v7175_v10, %v579_v17  ;;  %v159_v27 = vand.u32 4294901760, %v7185_v18  ;;  %v585_v31 = vand.u32 4294901760, %v7187_v19  ;;  %s5503_s8 = sshll.u32 %s7130_s7, 4  ;;  %s5504_s8 = int_to_ptr.vmem [resolvable:$true] %s5503_s8 }
  0x2d   :  { %6462 = vmatprep.subr.bf16.mxu0 %v7190_v21  ;;  %v138_v28 = vand.u32 4294901760, %v7193_v22  ;;  %v657_v29 = vand.u32 4294901760, %v7198_v23  ;;  %v166_v30 = vand.u32 4294901760, %v165_v24  ;;  %v7220_v35 = vsub.f32 %v7180_v15, %v582_v20  ;;  %s7093_s9 = scalar_lea.vmem %s5504_s8, 32  ;;  %p7098_p3 = scmp.lt.s32.totalorder %s5504_s8, %s5504_s8 }
  0x2e   :  { %6464 = vmatpush3.bf16.msra.mxu0 %v7190_v21  ;;  %v148_v32 = vand.u32 4294901760, %v7201_v25  ;;  %v664_v33 = vand.u32 4294901760, %v7206_v26  ;;  %v160_v34 = vsub.f32 %v7185_v18, %v159_v27  ;;  %v677_v46 = vsub.f32 %v7187_v19, %v585_v31  ;;  %p7094_p2 = scmp.ne.s32.totalorder %s5504_s8, %s7093_s9  ;;  %p7099_p4 = scmp.lt.s32.totalorder %s7093_s9, %s7093_s9 }
  0x2f   :  { %v139_v36 = vsub.f32 %v7193_v22, %v138_v28  ;;  %v658_v37 = vsub.f32 %v7198_v23, %v657_v29  ;;  %v167_v38 = vsub.f32 %v165_v24, %v166_v30  ;;  %v671_v42 = vand.u32 4294901760, %v7220_v35 }
  0x30   :  { %v149_v39 = vsub.f32 %v7201_v25, %v148_v32  ;;  %v665_v40 = vsub.f32 %v7206_v26, %v664_v33  ;;  %v161_v41 = vand.u32 4294901760, %v160_v34  ;;  %v678_v51 = vand.u32 4294901760, %v677_v46  ;;  %p7100_p5 = por %p7099_p4, %p7098_p3 }
  0x31   :  { %v140_v43 = vand.u32 4294901760, %v139_v36  ;;  %v659_v44 = vand.u32 4294901760, %v658_v37  ;;  %v168_v45 = vand.u32 4294901760, %v167_v38  ;;  %v672_v49 = vsub.f32 %v7220_v35, %v671_v42 }
  0x32   :  { %v150_v47 = vand.u32 4294901760, %v149_v39  ;;  %v666_v48 = vand.u32 4294901760, %v665_v40  ;;  %v6469_v52 = vpack.c.bf16 %v165_v24, %v7185_v18  ;;  %v679_v55 = vsub.f32 %v677_v46, %v678_v51  ;;  %p7101_p6 = pnand %p7100_p5, %p7094_p2 }
  0x33   :  { %5829 = vmatprep.mubr.f32.mxu0 %v140_v43  ;;  %v6465_v50 = vpack.c.bf16 %v168_v45, %v161_v41  ;;  %v673_v54 = vand.u32 4294901760, %v672_v49  ;;  %v7242_v58 = vpack.c.bf16 %v7206_v26, %v7198_v23  ;;  %v7251_v59 = vpack.c.bf16 %v677_v46, %v7220_v35 }
  0x34   :  { %5830 = vmatmul.mubr.f32.vlgmr.msra.gmra.mrb[0].mxu0 %v150_v47  ;;  %v7232_v53 = vpack.c.bf16 %v666_v48, %v659_v44  ;;  %v680_v56 = vand.u32 4294901760, %v679_v55  ;;  %v6477_v60 = vpack.c.bf16 %v166_v30, %v159_v27  ;;  %v7260_v61 = vpack.c.bf16 %v579_v17, %v576_v14 }
  0x35   :  { %6466 = vmatprep.subr.bf16.mxu0 %v6465_v50  ;;  %5836 = vmatprep.mubr.f32.mxu0 %v7177_v13  ;;  %v7269_v62 = vpack.c.bf16 %v585_v31, %v582_v20  ;;  %v7278_v63 = vpack.c.bf16 %v664_v33, %v657_v29  ;;  %v7285_v2 = vpack.c.bf16 %v678_v51, %v671_v42  ;;  %vm1117_vm3 = vcmask 1041409  }
  0x36   :  { %6493 = vmatpush3.bf16.msra.mxu1 %v7232_v53  ;;  %6468 = vmatpush3.bf16.msra.mxu0 %v6465_v50  ;;  %v7237_v57 = vpack.c.bf16 %v680_v56, %v673_v54  ;;  %vm571_vm4 = vcmask 261120   ;;  %vm5495_vm5 = vcmask 156672  }
  0x37   :  { %6494 = vmatprep.subr.bf16.mxu1 %v7125_v0  ;;  %6470 = vmatprep.subr.bf16.mxu0 %v6469_v52 }
  0x3a   :  { %6496 = vmatpush3.bf16.msra.mxu1 %v7237_v57 }
  0x3b   :  { %6497 = vmatprep.subr.bf16.mxu1 %v7125_v0 }
  0x3c   :  { %5837 = vmatmul.mubr.f32.vlgmr.msra.gmra.mrb[0].mxu0 %v7182_v16 }
  0x3d   :  { %6472 = vmatpush3.bf16.msra.mxu0 %v6469_v52  ;;  %5843 = vmatprep.mubr.f32.mxu0 %v7193_v22 }
  0x3e   :  { %5887 = vmatmul.mubr.f32.vlgmr.msra.gmra.mrb[0].mxu1 %v7127_v1  ;;  %6474 = vmatprep.subr.bf16.mxu0 %v7190_v21 }
  0x3f   :  { %6499 = vmatpush3.bf16.msra.mxu1 %v7242_v58  ;;  %5897 = vmatprep.mubr.msk.f32.mxu1 %vm7126_vm0, %v7127_v1 }
  0x40   :  { %6500 = vmatprep.subr.bf16.mxu1 %v7125_v0 }
  0x43   :  { %6502 = vmatpush3.bf16.msra.mxu1 %v7251_v59 }
  0x44   :  { %6503 = vmatprep.subr.bf16.mxu1 %v7125_v0  ;;  %5844 = vmatmul.mubr.f32.vlgmr.msra.gmra.mrb[0].mxu0 %v7201_v25 }
  0x45   :  { %6476 = vmatpush3.bf16.msra.mxu0 %v7190_v21  ;;  %5850 = vmatprep.mubr.f32.mxu0 %v138_v28 }
  0x46   :  { %5898 = vmatmul.mubr.f32.vlgmr.msra.gmra.mrb[0].mxu1 %v7127_v1  ;;  %6478 = vmatprep.subr.bf16.mxu0 %v6477_v60 }
  0x47   :  { %6505 = vmatpush3.bf16.msra.mxu1 %v7260_v61  ;;  %5908 = vmatprep.mubr.msk.f32.mxu1 %vm7126_vm0, %v7127_v1 }
  0x48   :  { %6506 = vmatprep.subr.bf16.mxu1 %v7125_v0 }
  0x4b   :  { %6508 = vmatpush3.bf16.msra.mxu1 %v7269_v62 }
  0x4c   :  { %6509 = vmatprep.subr.bf16.mxu1 %v7125_v0  ;;  %5851 = vmatmul.mubr.f32.vlgmr.msra.gmra.mrb[0].mxu0 %v148_v32 }
  0x4d   :  { %6480 = vmatpush3.bf16.msra.mxu0 %v6477_v60  ;;  %5857 = vmatprep.mubr.f32.mxu0 %v7177_v13 }
  0x4e   :  { %5909 = vmatmul.mubr.f32.vlgmr.msra.gmra.mrb[0].mxu1 %v7127_v1  ;;  %6482 = vmatprep.subr.bf16.mxu0 %v7190_v21 }
  0x4f   :  { %6511 = vmatpush3.bf16.msra.mxu1 %v7278_v63  ;;  %5919 = vmatprep.mubr.msk.f32.mxu1 %vm7126_vm0, %v7127_v1 }
  0x50   :  { %6512 = vmatprep.subr.bf16.mxu1 %v7125_v0 }
  0x53   :  { %6514 = vmatpush3.bf16.msra.mxu1 %v7285_v2 }
  0x54   :  { %6515 = vmatprep.subr.bf16.mxu1 %v7125_v0  ;;  %5858 = vmatmul.mubr.f32.vlgmr.msra.gmra.mrb[0].mxu0 %v7182_v16 }
  0x55   :  { %6484 = vmatpush3.bf16.msra.mxu0 %v7190_v21  ;;  %5864 = vmatprep.mubr.f32.mxu0 %v7177_v13 }
  0x56   :  { %5920 = vmatmul.mubr.f32.vlgmr.msra.gmra.mrb[0].mxu1 %v7127_v1  ;;  %6485 = vmatprep.subr.bf16.mxu0 %v7125_v0 }
  0x57   :  { %6517 = vmatpush3.bf16.msra.mxu1 %v7260_v61  ;;  %5930 = vmatprep.mubr.msk.f32.mxu1 %vm7126_vm0, %v7127_v1 }
  0x58   :  { %6518 = vmatprep.subr.bf16.mxu1 %v7125_v0 }
  0x5b   :  { %6520 = vmatpush3.bf16.msra.mxu1 %v7269_v62 }
  0x5c   :  { %5865 = vmatmul.mubr.f32.vlgmr.msra.gmra.mrb[0].mxu0 %v7182_v16  ;;  %6557 = vmatprep.subr.bf16.mxu1 %v7125_v0 }
  0x5d   :  { %6487 = vmatpush3.bf16.msra.mxu0 %v7260_v61  ;;  %5875 = vmatprep.mubr.msk.f32.mxu0 %vm7126_vm0, %v7127_v1 }
  0x5e   :  { %5931 = vmatmul.mubr.f32.vlgmr.msra.gmra.mrb[0].mxu1 %v7127_v1  ;;  %6488 = vmatprep.subr.bf16.mxu0 %v7125_v0 }
  0x5f   :  { %6559 = vmatpush3.bf16.msra.mxu1 %v7260_v61  ;;  %6007 = vmatprep.mubr.msk.f32.mxu1 %vm7126_vm0, %v7127_v1 }
  0x60   :  { %6560 = vmatprep.subr.bf16.mxu1 %v7125_v0 }
  0x61   :  { %6490 = vmatpush3.bf16.msra.mxu0 %v7269_v62 }
  0x62   :  { %6521 = vmatprep.subr.bf16.mxu0 %v7125_v0 }
  0x63   :  { %6562 = vmatpush3.bf16.msra.mxu1 %v7269_v62 }
  0x64   :  { %5876 = vmatmul.mubr.f32.vlgmr.msra.gmra.mrb[2].mxu0 %v7127_v1  ;;  %6563 = vmatprep.subr.bf16.mxu1 %v7125_v0 }
  0x65   :  { %6523 = vmatpush3.bf16.msra.mxu0 %v7260_v61  ;;  %5941 = vmatprep.mubr.msk.f32.mxu0 %vm7126_vm0, %v7127_v1 }
  0x66   :  { %6524 = vmatprep.subr.bf16.mxu0 %v7125_v0 }
  0x69   :  { %6526 = vmatpush3.bf16.msra.mxu0 %v7269_v62 }
  0x6a   :  { %6527 = vmatprep.subr.bf16.mxu0 %v7125_v0 }
 0x12f   :  { %v5866_v3 = vpop.f32.mrb[0].mxu0 }
 0x130   :  { %v561_v4 = vpop.f32.mrb[1].mxu0  ;;  %v7324_v11 = vadd.f32 %v5866_v3, %v5513_v7 }
 0x131   :  { %v1056_v5 = vpop.f32.mrb[0].mxu1  ;;  %v7327_v14 = vadd.f32 %v5513_v7, %v561_v4 }
 0x132   :  { %v5932_v6 = vpop.f32.mrb[1].mxu1 }
 0x137   :  { %v650_v8 = vpop.f32.mrb[2].mxu0 }
 0x138   :  { %v6811_v9 = vadd.f32 %v1056_v5, %v650_v8  ;;  %v5877_v10 = vpop.f32.mrb[3].mxu0 }
 0x13a   :  { %v1061_v12 = vrot.slane %v6811_v9, 1  ;;  %v1064_v15 = vadd.f32 %v6811_v9, %v7327_v14 }
 0x13c   :  { %v1065_v13 = vadd.f32 %v7324_v11, %v1061_v12  ;;  %v5514_v19 = vmul.f32 -1.442695, %v1064_v15 }
 0x13e   :  { %6921 = vtanh.f32 %v1065_v13  ;;  %v5515_v18 = vmul.f32 -1.442695, %v1065_v13 }
 0x13f   :  { %6923 = vtanh.f32 %v1064_v15 }
 0x140   :  { %6925 = vpow2.f32 %v5515_v18 }
 0x141   :  { %6927 = vpow2.f32 %v5514_v19 }
 0x148   :  { %v6922_v16 = vpop.eup %6921 }
 0x149   :  { %1086 = vrot.lane.b32.xlu0 %v6922_v16, %s7128_s1  ;;  %v6924_v17 = vpop.eup %6923 }
 0x14a   :  { %v6926_v20 = vpop.eup %6925 }
 0x14b   :  { %v1073_v21 = vadd.f32 1.0, %v6926_v20  ;;  %v6928_v22 = vpop.eup %6927 }
 0x14c   :  { %v1072_v23 = vadd.f32 1.0, %v6928_v22 }
 0x14d   :  { %1084 = vrot.lane.b32.xlu0 %v6924_v17, %s7128_s1  ;;  %6929 = vrcp.f32 %v1073_v21 }
 0x14e   :  { %6931 = vrcp.f32 %v1072_v23 }
 0x157   :  { %v6930_v24 = vpop.eup %6929 }
 0x158   :  { %v6932_v27 = vpop.eup %6931  ;;  %v1081_v30 = vmul.f32 0.0, %v6930_v24 }
 0x159   :  { %v1080_v33 = vmul.f32 0.0, %v6932_v27 }
 0x1bb   :  { %v1087_v25 = vpop.permute.xlu0 %1086 }
 0x1bc   :  { %v1091_v26 = vmul.f32 %v6930_v24, %v1087_v25 }
 0x1be   :  { %1096 = vrot.lane.b32.xlu1 %v1091_v26, %s7129_s6 }
 0x1bf   :  { %v1085_v28 = vpop.permute.xlu0 %1084 }
 0x1c0   :  { %v1090_v29 = vmul.f32 %v6932_v27, %v1085_v28 }
 0x1c2   :  { %1094 = vrot.lane.b32.xlu1 %v1090_v29, %s7129_s6 }
 0x230   :  { %v1097_v31 = vpop.permute.xlu1 %1096 }
 0x231   :  { %v7334_v32 = vadd.f32 %v1097_v31, %v1081_v30 }
 0x233   :  { %6933 = vtanh.f32 %v7334_v32  ;;  %v1631_v18 = vrot.slane %v7334_v32, 7 }
 0x234   :  { %v1095_v34 = vpop.permute.xlu1 %1094 }
 0x235   :  { %v7337_v35 = vadd.f32 %v1095_v34, %v1080_v33 }
 0x237   :  { %6935 = vtanh.f32 %v7337_v35  ;;  %v1630_v20 = vrot.slane %v7337_v35, 7 }
 0x23d   :  { %v6934_v36 = vpop.eup %6933 }
 0x23e   :  { %1108 = vrot.lane.b32.xlu0 %v6934_v36, %s7128_s1 }
 0x241   :  { %v6936_v37 = vpop.eup %6935 }
 0x242   :  { %1106 = vrot.lane.b32.xlu1 %v6936_v37, %s7128_s1 }
 0x2b0   :  { %v1109_v38 = vpop.permute.xlu0 %1108 }
 0x2b1   :  { %v1113_v39 = vmul.f32 %v6930_v24, %v1109_v38 }
 0x2b3   :  { %v1116_v41 = vrot.slane %v1113_v39, 7 }
 0x2b4   :  { %v1107_v40 = vpop.permute.xlu1 %1106 }
 0x2b5   :  { %v1112_v42 = vmul.f32 %v6932_v27, %v1107_v40 }
 0x2b7   :  { %v1118_v43 = vsel %vm1117_vm3, %v1116_v41, %v1112_v42 }
 0x2b8   :  { %1119 = vrot.lane.b32.xlu0 %v1118_v43, %s7129_s6 }
 0x32a   :  { %v1120_v44 = vpop.permute.xlu0 %1119 }
 0x32b   :  { %v1121_v45 = vsel %vm571_vm4, %v1120_v44, 0 }
 0x32c   :  { %v1192_v46 = vand.u32 4294901760, %v1121_v45 }
 0x32e   :  { %v1193_v47 = vsub.f32 %v1121_v45, %v1192_v46 }
 0x330   :  { %v1194_v48 = vand.u32 4294901760, %v1193_v47 }
 0x332   :  { %v1195_v49 = vsub.f32 %v1193_v47, %v1194_v48 }
 0x334   :  { %v1196_v50 = vand.u32 4294901760, %v1195_v49 }
 0x336   :  { %5942 = vmatmul.mubr.f32.vlgmr.msra.gmra.mrb[4].mxu0 %v1196_v50 }
 0x337   :  { %6529 = vmatpush3.bf16.msra.mxu0 %v7232_v53  ;;  %5952 = vmatprep.mubr.msk.f32.mxu0 %vm7126_vm0, %v7127_v1 }
 0x338   :  { %6530 = vmatprep.subr.bf16.mxu0 %v7125_v0 }
 0x33b   :  { %6532 = vmatpush3.bf16.msra.mxu0 %v7237_v57 }
 0x33c   :  { %6533 = vmatprep.subr.bf16.mxu0 %v7125_v0 }
 0x33e   :  { %5953 = vmatmul.mubr.f32.vlgmr.msra.gmra.mrb[4].mxu0 %v1192_v46 }
 0x33f   :  { %6535 = vmatpush3.bf16.msra.mxu0 %v7242_v58  ;;  %5963 = vmatprep.mubr.msk.f32.mxu0 %vm7126_vm0, %v7127_v1 }
 0x340   :  { %6536 = vmatprep.subr.bf16.mxu0 %v7125_v0 }
 0x343   :  { %6538 = vmatpush3.bf16.msra.mxu0 %v7251_v59 }
 0x344   :  { %6539 = vmatprep.subr.bf16.mxu0 %v7125_v0 }
 0x346   :  { %5964 = vmatmul.mubr.f32.vlgmr.msra.gmra.mrb[4].mxu0 %v1193_v47 }
 0x347   :  { %6541 = vmatpush3.bf16.msra.mxu0 %v7260_v61  ;;  %5974 = vmatprep.mubr.msk.f32.mxu0 %vm7126_vm0, %v7127_v1 }
 0x348   :  { %6542 = vmatprep.subr.bf16.mxu0 %v7125_v0 }
 0x34b   :  { %6544 = vmatpush3.bf16.msra.mxu0 %v7269_v62 }
 0x34c   :  { %6545 = vmatprep.subr.bf16.mxu0 %v7125_v0 }
 0x34e   :  { %5975 = vmatmul.mubr.f32.vlgmr.msra.gmra.mrb[4].mxu0 %v1194_v48 }
 0x34f   :  { %6547 = vmatpush3.bf16.msra.mxu0 %v7278_v63  ;;  %5985 = vmatprep.mubr.msk.f32.mxu0 %vm7126_vm0, %v7127_v1 }
 0x350   :  { %6548 = vmatprep.subr.bf16.mxu0 %v7125_v0 }
 0x353   :  { %6550 = vmatpush3.bf16.msra.mxu0 %v7285_v2 }
 0x354   :  { %6551 = vmatprep.subr.bf16.mxu0 %v7125_v0 }
 0x356   :  { %5986 = vmatmul.mubr.f32.vlgmr.msra.gmra.mrb[4].mxu0 %v1192_v46 }
 0x357   :  { %6553 = vmatpush3.bf16.msra.mxu0 %v7260_v61  ;;  %5996 = vmatprep.mubr.msk.f32.mxu0 %vm7126_vm0, %v7127_v1 }
 0x358   :  { %6554 = vmatprep.subr.bf16.mxu0 %v7125_v0 }
 0x35b   :  { %6556 = vmatpush3.bf16.msra.mxu0 %v7269_v62 }
 0x35c   :  { %6593 = vmatprep.subr.bf16.mxu0 %v7125_v0 }
 0x35e   :  { %5997 = vmatmul.mubr.f32.vlgmr.msra.gmra.mrb[4].mxu0 %v1192_v46 }
 0x35f   :  { %6595 = vmatpush3.bf16.msra.mxu0 %v7260_v61  ;;  %6073 = vmatprep.mubr.msk.f32.mxu0 %vm7126_vm0, %v7127_v1 }
 0x360   :  { %6596 = vmatprep.subr.bf16.mxu0 %v7125_v0 }
 0x363   :  { %6598 = vmatpush3.bf16.msra.mxu0 %v7269_v62 }
 0x364   :  { %6599 = vmatprep.subr.bf16.mxu0 %v7125_v0 }
 0x431   :  { %v1604_v51 = vpop.f32.mrb[4].mxu0 }
 0x432   :  { %v1609_v52 = vrot.slane %v1604_v51, 7  ;;  %v1613_v54 = vadd.f32 %v7324_v11, %v1604_v51  ;;  %v5998_v55 = vpop.f32.mrb[5].mxu0 }
 0x434   :  { %v1612_v56 = vadd.f32 %v7327_v14, %v1609_v52  ;;  %6937 = vtanh.f32 %v1613_v54  ;;  %v5517_v4 = vmul.f32 -1.442695, %v1613_v54 }
 0x436   :  { %6939 = vtanh.f32 %v1612_v56  ;;  %v5516_v5 = vmul.f32 -1.442695, %v1612_v56 }
 0x437   :  { %6941 = vpow2.f32 %v5517_v4 }
 0x438   :  { %6943 = vpow2.f32 %v5516_v5 }
 0x43e   :  { %v6938_v60 = vpop.eup %6937 }
 0x43f   :  { %1640 = vrot.lane.b32.xlu0 %v6938_v60, %s7128_s1 }
 0x440   :  { %v6940_v3 = vpop.eup %6939 }
 0x441   :  { %1638 = vrot.lane.b32.xlu1 %v6940_v3, %s7128_s1  ;;  %v6942_v6 = vpop.eup %6941 }
 0x442   :  { %v6944_v7 = vpop.eup %6943  ;;  %v1621_v8 = vadd.f32 1.0, %v6942_v6 }
 0x443   :  { %v1620_v9 = vadd.f32 1.0, %v6944_v7 }
 0x444   :  { %6945 = vrcp.f32 %v1621_v8 }
 0x445   :  { %6947 = vrcp.f32 %v1620_v9 }
 0x44e   :  { %v6946_v10 = vpop.eup %6945 }
 0x44f   :  { %v6948_v15 = vpop.eup %6947  ;;  %v1635_v19 = vmul.f32 %v6946_v10, %v1631_v18 }
 0x450   :  { %v1634_v23 = vmul.f32 %v6948_v15, %v1630_v20 }
 0x4b1   :  { %v1641_v12 = vpop.permute.xlu0 %1640 }
 0x4b2   :  { %v1645_v13 = vmul.f32 %v6946_v10, %v1641_v12 }
 0x4b3   :  { %v1639_v16 = vpop.permute.xlu1 %1638 }
 0x4b4   :  { %1650 = vrot.lane.b32.xlu0 %v1645_v13, %s7129_s6  ;;  %v1644_v17 = vmul.f32 %v6948_v15, %v1639_v16 }
 0x4b6   :  { %1648 = vrot.lane.b32.xlu1 %v1644_v17, %s7129_s6 }
 0x526   :  { %v1651_v21 = vpop.permute.xlu0 %1650 }
 0x527   :  { %v7389_v22 = vadd.f32 %v1651_v21, %v1635_v19 }
 0x528   :  { %v1649_v24 = vpop.permute.xlu1 %1648 }
 0x529   :  { %6949 = vtanh.f32 %v7389_v22  ;;  %v7392_v25 = vadd.f32 %v1649_v24, %v1634_v23  ;;  %v2185_v8 = vrot.slane %v7389_v22, 7 }
 0x52b   :  { %6951 = vtanh.f32 %v7392_v25  ;;  %v2184_v7 = vrot.slane %v7392_v25, 7 }
 0x533   :  { %v6950_v26 = vpop.eup %6949 }
 0x534   :  { %1662 = vrot.lane.b32.xlu0 %v6950_v26, %s7128_s1 }
 0x535   :  { %v6952_v27 = vpop.eup %6951 }
 0x536   :  { %1660 = vrot.lane.b32.xlu1 %v6952_v27, %s7128_s1 }
 0x5a6   :  { %v1663_v28 = vpop.permute.xlu0 %1662 }
 0x5a7   :  { %v1667_v31 = vmul.f32 %v6946_v10, %v1663_v28 }
 0x5a8   :  { %v1661_v29 = vpop.permute.xlu1 %1660 }
 0x5a9   :  { %v1666_v30 = vmul.f32 %v6948_v15, %v1661_v29 }
 0x5ab   :  { %v1670_v32 = vrot.slane %v1666_v30, 1 }
 0x5ad   :  { %v1671_v33 = vsel %vm1117_vm3, %v1667_v31, %v1670_v32 }
 0x5ae   :  { %1672 = vrot.lane.b32.xlu1 %v1671_v33, %s7129_s6 }
 0x620   :  { %v1673_v34 = vpop.permute.xlu1 %1672 }
 0x621   :  { %v1674_v35 = vsel %vm571_vm4, %v1673_v34, 0 }
 0x622   :  { %v1745_v36 = vand.u32 4294901760, %v1674_v35 }
 0x624   :  { %v1746_v37 = vsub.f32 %v1674_v35, %v1745_v36 }
 0x626   :  { %v1747_v38 = vand.u32 4294901760, %v1746_v37 }
 0x628   :  { %v1748_v39 = vsub.f32 %v1746_v37, %v1747_v38 }
 0x62a   :  { %v1749_v40 = vand.u32 4294901760, %v1748_v39 }
 0x62c   :  { %6008 = vmatmul.mubr.f32.vlgmr.msra.gmra.mrb[2].mxu1 %v1749_v40 }
 0x62d   :  { %6565 = vmatpush3.bf16.msra.mxu1 %v7232_v53  ;;  %6018 = vmatprep.mubr.msk.f32.mxu1 %vm7126_vm0, %v7127_v1 }
 0x62e   :  { %6566 = vmatprep.subr.bf16.mxu1 %v7125_v0 }
 0x631   :  { %6568 = vmatpush3.bf16.msra.mxu1 %v7237_v57 }
 0x632   :  { %6569 = vmatprep.subr.bf16.mxu1 %v7125_v0 }
 0x634   :  { %6019 = vmatmul.mubr.f32.vlgmr.msra.gmra.mrb[2].mxu1 %v1745_v36 }
 0x635   :  { %6571 = vmatpush3.bf16.msra.mxu1 %v7242_v58  ;;  %6029 = vmatprep.mubr.msk.f32.mxu1 %vm7126_vm0, %v7127_v1 }
 0x636   :  { %6572 = vmatprep.subr.bf16.mxu1 %v7125_v0 }
 0x639   :  { %6574 = vmatpush3.bf16.msra.mxu1 %v7251_v59 }
 0x63a   :  { %6575 = vmatprep.subr.bf16.mxu1 %v7125_v0 }
 0x63c   :  { %6030 = vmatmul.mubr.f32.vlgmr.msra.gmra.mrb[2].mxu1 %v1746_v37 }
 0x63d   :  { %6577 = vmatpush3.bf16.msra.mxu1 %v7260_v61  ;;  %6040 = vmatprep.mubr.msk.f32.mxu1 %vm7126_vm0, %v7127_v1 }
 0x63e   :  { %6578 = vmatprep.subr.bf16.mxu1 %v7125_v0 }
 0x641   :  { %6580 = vmatpush3.bf16.msra.mxu1 %v7269_v62 }
 0x642   :  { %6581 = vmatprep.subr.bf16.mxu1 %v7125_v0 }
 0x644   :  { %6041 = vmatmul.mubr.f32.vlgmr.msra.gmra.mrb[2].mxu1 %v1747_v38 }
 0x645   :  { %6583 = vmatpush3.bf16.msra.mxu1 %v7278_v63  ;;  %6051 = vmatprep.mubr.msk.f32.mxu1 %vm7126_vm0, %v7127_v1 }
 0x646   :  { %6584 = vmatprep.subr.bf16.mxu1 %v7125_v0 }
 0x649   :  { %6586 = vmatpush3.bf16.msra.mxu1 %v7285_v2 }
 0x64a   :  { %6587 = vmatprep.subr.bf16.mxu1 %v7125_v0 }
 0x64c   :  { %6052 = vmatmul.mubr.f32.vlgmr.msra.gmra.mrb[2].mxu1 %v1745_v36 }
 0x64d   :  { %6589 = vmatpush3.bf16.msra.mxu1 %v7260_v61  ;;  %6062 = vmatprep.mubr.msk.f32.mxu1 %vm7126_vm0, %v7127_v1 }
 0x64e   :  { %6590 = vmatprep.subr.bf16.mxu1 %v7125_v0 }
 0x651   :  { %6592 = vmatpush3.bf16.msra.mxu1 %v7269_v62 }
 0x652   :  { %6629 = vmatprep.subr.bf16.mxu1 %v7125_v0 }
 0x654   :  { %6063 = vmatmul.mubr.f32.vlgmr.msra.gmra.mrb[2].mxu1 %v1745_v36 }
 0x655   :  { %6631 = vmatpush3.bf16.msra.mxu1 %v7260_v61  ;;  %6139 = vmatprep.mubr.msk.f32.mxu1 %vm7126_vm0, %v7127_v1 }
 0x656   :  { %6632 = vmatprep.subr.bf16.mxu1 %v7125_v0 }
 0x659   :  { %6634 = vmatpush3.bf16.msra.mxu1 %v7269_v62 }
 0x65a   :  { %6635 = vmatprep.subr.bf16.mxu1 %v7125_v0 }
 0x727   :  { %v2157_v41 = vpop.f32.mrb[2].mxu1 }
 0x728   :  { %v2162_v42 = vrot.slane %v2157_v41, 6  ;;  %v2163_v43 = vrot.slane %v2157_v41, 7  ;;  %v6064_v44 = vpop.f32.mrb[3].mxu1 }
 0x72a   :  { %v2166_v45 = vadd.f32 %v7327_v14, %v2162_v42  ;;  %v2167_v46 = vadd.f32 %v7324_v11, %v2163_v43 }
 0x72c   :  { %6953 = vtanh.f32 %v2166_v45  ;;  %v5518_v49 = vmul.f32 -1.442695, %v2166_v45  ;;  %v5519_v50 = vmul.f32 -1.442695, %v2167_v46 }
 0x72d   :  { %6955 = vtanh.f32 %v2167_v46 }
 0x72e   :  { %6957 = vpow2.f32 %v5518_v49 }
 0x72f   :  { %6959 = vpow2.f32 %v5519_v50 }
 0x736   :  { %v6954_v47 = vpop.eup %6953 }
 0x737   :  { %v6956_v48 = vpop.eup %6955  ;;  %2192 = vrot.lane.b32.xlu0 %v6954_v47, %s7128_s1 }
 0x738   :  { %2194 = vrot.lane.b32.xlu1 %v6956_v48, %s7128_s1  ;;  %v6958_v51 = vpop.eup %6957 }
 0x739   :  { %v6960_v52 = vpop.eup %6959  ;;  %v2174_v54 = vadd.f32 1.0, %v6958_v51 }
 0x73a   :  { %v2175_v55 = vadd.f32 1.0, %v6960_v52 }
 0x73b   :  { %6961 = vrcp.f32 %v2174_v54 }
 0x73c   :  { %6963 = vrcp.f32 %v2175_v55 }
 0x745   :  { %v6962_v56 = vpop.eup %6961 }
 0x746   :  { %v6964_v3 = vpop.eup %6963  ;;  %v2188_v9 = vmul.f32 %v6962_v56, %v2184_v7 }
 0x747   :  { %v2189_v10 = vmul.f32 %v6964_v3, %v2185_v8 }
 0x7a9   :  { %v2193_v60 = vpop.permute.xlu0 %2192 }
 0x7aa   :  { %v2195_v4 = vpop.permute.xlu1 %2194  ;;  %v2198_v5 = vmul.f32 %v6962_v56, %v2193_v60 }
 0x7ab   :  { %v2199_v6 = vmul.f32 %v6964_v3, %v2195_v4 }
 0x7ac   :  { %2202 = vrot.lane.b32.xlu0 %v2198_v5, %s7129_s6 }
 0x7ad   :  { %2204 = vrot.lane.b32.xlu1 %v2199_v6, %s7129_s6 }
 0x81e   :  { %v2203_v12 = vpop.permute.xlu0 %2202 }
 0x81f   :  { %v2205_v13 = vpop.permute.xlu1 %2204  ;;  %v7444_v15 = vadd.f32 %v2203_v12, %v2188_v9 }
 0x820   :  { %v7446_v16 = vadd.f32 %v2205_v13, %v2189_v10 }
 0x821   :  { %6965 = vtanh.f32 %v7444_v15  ;;  %v2739_v54 = vrot.slane %v7444_v15, 7 }
 0x822   :  { %6967 = vtanh.f32 %v7446_v16  ;;  %v2740_v55 = vrot.slane %v7446_v16, 7 }
 0x82b   :  { %v6966_v17 = vpop.eup %6965 }
 0x82c   :  { %v6968_v18 = vpop.eup %6967  ;;  %2214 = vrot.lane.b32.xlu0 %v6966_v17, %s7128_s1 }
 0x82d   :  { %2216 = vrot.lane.b32.xlu1 %v6968_v18, %s7128_s1 }
 0x89e   :  { %v2215_v19 = vpop.permute.xlu0 %2214 }
 0x89f   :  { %v2217_v20 = vpop.permute.xlu1 %2216  ;;  %v2220_v21 = vmul.f32 %v6962_v56, %v2215_v19 }
 0x8a0   :  { %v2221_v22 = vmul.f32 %v6964_v3, %v2217_v20 }
 0x8a1   :  { %v2224_v23 = vrot.slane %v2220_v21, 2 }
 0x8a2   :  { %v2225_v24 = vrot.slane %v2221_v22, 1 }
 0x8a4   :  { %v2226_v25 = vsel %vm1117_vm3, %v2225_v24, %v2224_v23 }
 0x8a5   :  { %2227 = vrot.lane.b32.xlu0 %v2226_v25, %s7129_s6 }
 0x917   :  { %v2228_v26 = vpop.permute.xlu0 %2227 }
 0x918   :  { %v2229_v27 = vsel %vm571_vm4, %v2228_v26, 0 }
 0x919   :  { %v2300_v28 = vand.u32 4294901760, %v2229_v27 }
 0x91b   :  { %v2301_v29 = vsub.f32 %v2229_v27, %v2300_v28 }
 0x91d   :  { %v2302_v30 = vand.u32 4294901760, %v2301_v29 }
 0x91f   :  { %v2303_v31 = vsub.f32 %v2301_v29, %v2302_v30 }
 0x921   :  { %v2304_v32 = vand.u32 4294901760, %v2303_v31 }
 0x923   :  { %6074 = vmatmul.mubr.f32.vlgmr.msra.gmra.mrb[6].mxu0 %v2304_v32 }
 0x924   :  { %6601 = vmatpush3.bf16.msra.mxu0 %v7232_v53  ;;  %6084 = vmatprep.mubr.msk.f32.mxu0 %vm7126_vm0, %v7127_v1 }
 0x925   :  { %6602 = vmatprep.subr.bf16.mxu0 %v7125_v0 }
 0x928   :  { %6604 = vmatpush3.bf16.msra.mxu0 %v7237_v57 }
 0x929   :  { %6605 = vmatprep.subr.bf16.mxu0 %v7125_v0 }
 0x92b   :  { %6085 = vmatmul.mubr.f32.vlgmr.msra.gmra.mrb[6].mxu0 %v2300_v28 }
 0x92c   :  { %6607 = vmatpush3.bf16.msra.mxu0 %v7242_v58  ;;  %6095 = vmatprep.mubr.msk.f32.mxu0 %vm7126_vm0, %v7127_v1 }
 0x92d   :  { %6608 = vmatprep.subr.bf16.mxu0 %v7125_v0 }
 0x930   :  { %6610 = vmatpush3.bf16.msra.mxu0 %v7251_v59 }
 0x931   :  { %6611 = vmatprep.subr.bf16.mxu0 %v7125_v0 }
 0x933   :  { %6096 = vmatmul.mubr.f32.vlgmr.msra.gmra.mrb[6].mxu0 %v2301_v29 }
 0x934   :  { %6613 = vmatpush3.bf16.msra.mxu0 %v7260_v61  ;;  %6106 = vmatprep.mubr.msk.f32.mxu0 %vm7126_vm0, %v7127_v1 }
 0x935   :  { %6614 = vmatprep.subr.bf16.mxu0 %v7125_v0 }
 0x938   :  { %6616 = vmatpush3.bf16.msra.mxu0 %v7269_v62 }
 0x939   :  { %6617 = vmatprep.subr.bf16.mxu0 %v7125_v0 }
 0x93b   :  { %6107 = vmatmul.mubr.f32.vlgmr.msra.gmra.mrb[6].mxu0 %v2302_v30 }
 0x93c   :  { %6619 = vmatpush3.bf16.msra.mxu0 %v7278_v63  ;;  %6117 = vmatprep.mubr.msk.f32.mxu0 %vm7126_vm0, %v7127_v1 }
 0x93d   :  { %6620 = vmatprep.subr.bf16.mxu0 %v7125_v0 }
 0x940   :  { %6622 = vmatpush3.bf16.msra.mxu0 %v7285_v2 }
 0x941   :  { %6623 = vmatprep.subr.bf16.mxu0 %v7125_v0 }
 0x943   :  { %6118 = vmatmul.mubr.f32.vlgmr.msra.gmra.mrb[6].mxu0 %v2300_v28 }
 0x944   :  { %6625 = vmatpush3.bf16.msra.mxu0 %v7260_v61  ;;  %6128 = vmatprep.mubr.msk.f32.mxu0 %vm7126_vm0, %v7127_v1 }
 0x945   :  { %6626 = vmatprep.subr.bf16.mxu0 %v7125_v0 }
 0x948   :  { %6628 = vmatpush3.bf16.msra.mxu0 %v7269_v62 }
 0x949   :  { %6665 = vmatprep.subr.bf16.mxu0 %v7125_v0 }
 0x94b   :  { %6129 = vmatmul.mubr.f32.vlgmr.msra.gmra.mrb[6].mxu0 %v2300_v28 }
 0x94c   :  { %6667 = vmatpush3.bf16.msra.mxu0 %v7260_v61  ;;  %6205 = vmatprep.mubr.msk.f32.mxu0 %vm7126_vm0, %v7127_v1 }
 0x94d   :  { %6668 = vmatprep.subr.bf16.mxu0 %v7125_v0 }
 0x950   :  { %6670 = vmatpush3.bf16.msra.mxu0 %v7269_v62 }
 0x951   :  { %6671 = vmatprep.subr.bf16.mxu0 %v7125_v0 }
 0xa1e   :  { %v2712_v33 = vpop.f32.mrb[6].mxu0 }
 0xa1f   :  { %v2717_v34 = vrot.slane %v2712_v33, 5  ;;  %v2718_v35 = vrot.slane %v2712_v33, 6  ;;  %v6130_v36 = vpop.f32.mrb[7].mxu0 }
 0xa21   :  { %v2721_v37 = vadd.f32 %v7327_v14, %v2717_v34  ;;  %v2722_v38 = vadd.f32 %v7324_v11, %v2718_v35 }
 0xa23   :  { %6969 = vtanh.f32 %v2721_v37  ;;  %v5520_v41 = vmul.f32 -1.442695, %v2721_v37  ;;  %v5521_v42 = vmul.f32 -1.442695, %v2722_v38 }
 0xa24   :  { %6971 = vtanh.f32 %v2722_v38 }
 0xa25   :  { %6973 = vpow2.f32 %v5520_v41 }
 0xa26   :  { %6975 = vpow2.f32 %v5521_v42 }
 0xa2d   :  { %v6970_v39 = vpop.eup %6969 }
 0xa2e   :  { %v6972_v40 = vpop.eup %6971  ;;  %2747 = vrot.lane.b32.xlu1 %v6970_v39, %s7128_s1 }
 0xa2f   :  { %2749 = vrot.lane.b32.xlu0 %v6972_v40, %s7128_s1  ;;  %v6974_v43 = vpop.eup %6973 }
 0xa30   :  { %v6976_v44 = vpop.eup %6975  ;;  %v2729_v45 = vadd.f32 1.0, %v6974_v43 }
 0xa31   :  { %v2730_v46 = vadd.f32 1.0, %v6976_v44 }
 0xa32   :  { %6977 = vrcp.f32 %v2729_v45 }
 0xa33   :  { %6979 = vrcp.f32 %v2730_v46 }
 0xa3c   :  { %v6978_v47 = vpop.eup %6977 }
 0xa3d   :  { %v6980_v49 = vpop.eup %6979  ;;  %v2743_v56 = vmul.f32 %v6978_v47, %v2739_v54 }
 0xa3e   :  { %v2744_v60 = vmul.f32 %v6980_v49, %v2740_v55 }
 0xaa0   :  { %v2748_v48 = vpop.permute.xlu1 %2747 }
 0xaa1   :  { %v2750_v50 = vpop.permute.xlu0 %2749  ;;  %v2753_v51 = vmul.f32 %v6978_v47, %v2748_v48 }
 0xaa2   :  { %v2754_v52 = vmul.f32 %v6980_v49, %v2750_v50 }
 0xaa3   :  { %2757 = vrot.lane.b32.xlu1 %v2753_v51, %s7129_s6 }
 0xaa4   :  { %2759 = vrot.lane.b32.xlu0 %v2754_v52, %s7129_s6 }
 0xb15   :  { %v2758_v3 = vpop.permute.xlu1 %2757 }
 0xb16   :  { %v2760_v4 = vpop.permute.xlu0 %2759  ;;  %v7499_v5 = vadd.f32 %v2758_v3, %v2743_v56 }
 0xb17   :  { %v7501_v6 = vadd.f32 %v2760_v4, %v2744_v60 }
 0xb18   :  { %6981 = vtanh.f32 %v7499_v5  ;;  %v3294_v45 = vrot.slane %v7499_v5, 7 }
 0xb19   :  { %6983 = vtanh.f32 %v7501_v6  ;;  %v3295_v46 = vrot.slane %v7501_v6, 7 }
 0xb22   :  { %v6982_v7 = vpop.eup %6981 }
 0xb23   :  { %v6984_v8 = vpop.eup %6983  ;;  %2769 = vrot.lane.b32.xlu1 %v6982_v7, %s7128_s1 }
 0xb24   :  { %2771 = vrot.lane.b32.xlu0 %v6984_v8, %s7128_s1 }
 0xb95   :  { %v2770_v9 = vpop.permute.xlu1 %2769 }
 0xb96   :  { %v2772_v10 = vpop.permute.xlu0 %2771  ;;  %v2775_v12 = vmul.f32 %v6978_v47, %v2770_v9 }
 0xb97   :  { %v2776_v13 = vmul.f32 %v6980_v49, %v2772_v10 }
 0xb98   :  { %v2779_v15 = vrot.slane %v2775_v12, 3 }
 0xb99   :  { %v2780_v16 = vrot.slane %v2776_v13, 2 }
 0xb9b   :  { %v2781_v17 = vsel %vm1117_vm3, %v2780_v16, %v2779_v15 }
 0xb9c   :  { %2782 = vrot.lane.b32.xlu1 %v2781_v17, %s7129_s6 }
 0xc0e   :  { %v2783_v18 = vpop.permute.xlu1 %2782 }
 0xc0f   :  { %v2784_v19 = vsel %vm571_vm4, %v2783_v18, 0 }
 0xc10   :  { %v2855_v20 = vand.u32 4294901760, %v2784_v19 }
 0xc12   :  { %v2856_v21 = vsub.f32 %v2784_v19, %v2855_v20 }
 0xc14   :  { %v2857_v22 = vand.u32 4294901760, %v2856_v21 }
 0xc16   :  { %v2858_v23 = vsub.f32 %v2856_v21, %v2857_v22 }
 0xc18   :  { %v2859_v24 = vand.u32 4294901760, %v2858_v23 }
 0xc1a   :  { %6140 = vmatmul.mubr.f32.vlgmr.msra.gmra.mrb[4].mxu1 %v2859_v24 }
 0xc1b   :  { %6637 = vmatpush3.bf16.msra.mxu1 %v7232_v53  ;;  %6150 = vmatprep.mubr.msk.f32.mxu1 %vm7126_vm0, %v7127_v1 }
 0xc1c   :  { %6638 = vmatprep.subr.bf16.mxu1 %v7125_v0 }
 0xc1f   :  { %6640 = vmatpush3.bf16.msra.mxu1 %v7237_v57 }
 0xc20   :  { %6641 = vmatprep.subr.bf16.mxu1 %v7125_v0 }
 0xc22   :  { %6151 = vmatmul.mubr.f32.vlgmr.msra.gmra.mrb[4].mxu1 %v2855_v20 }
 0xc23   :  { %6643 = vmatpush3.bf16.msra.mxu1 %v7242_v58  ;;  %6161 = vmatprep.mubr.msk.f32.mxu1 %vm7126_vm0, %v7127_v1 }
 0xc24   :  { %6644 = vmatprep.subr.bf16.mxu1 %v7125_v0 }
 0xc27   :  { %6646 = vmatpush3.bf16.msra.mxu1 %v7251_v59 }
 0xc28   :  { %6647 = vmatprep.subr.bf16.mxu1 %v7125_v0 }
 0xc2a   :  { %6162 = vmatmul.mubr.f32.vlgmr.msra.gmra.mrb[4].mxu1 %v2856_v21 }
 0xc2b   :  { %6649 = vmatpush3.bf16.msra.mxu1 %v7260_v61  ;;  %6172 = vmatprep.mubr.msk.f32.mxu1 %vm7126_vm0, %v7127_v1 }
 0xc2c   :  { %6650 = vmatprep.subr.bf16.mxu1 %v7125_v0 }
 0xc2f   :  { %6652 = vmatpush3.bf16.msra.mxu1 %v7269_v62 }
 0xc30   :  { %6653 = vmatprep.subr.bf16.mxu1 %v7125_v0 }
 0xc32   :  { %6173 = vmatmul.mubr.f32.vlgmr.msra.gmra.mrb[4].mxu1 %v2857_v22 }
 0xc33   :  { %6655 = vmatpush3.bf16.msra.mxu1 %v7278_v63  ;;  %6183 = vmatprep.mubr.msk.f32.mxu1 %vm7126_vm0, %v7127_v1 }
 0xc34   :  { %6656 = vmatprep.subr.bf16.mxu1 %v7125_v0 }
 0xc37   :  { %6658 = vmatpush3.bf16.msra.mxu1 %v7285_v2 }
 0xc38   :  { %6659 = vmatprep.subr.bf16.mxu1 %v7125_v0 }
 0xc3a   :  { %6184 = vmatmul.mubr.f32.vlgmr.msra.gmra.mrb[4].mxu1 %v2855_v20 }
 0xc3b   :  { %6661 = vmatpush3.bf16.msra.mxu1 %v7260_v61  ;;  %6194 = vmatprep.mubr.msk.f32.mxu1 %vm7126_vm0, %v7127_v1 }
 0xc3c   :  { %6662 = vmatprep.subr.bf16.mxu1 %v7125_v0 }
 0xc3f   :  { %6664 = vmatpush3.bf16.msra.mxu1 %v7269_v62 }
 0xc40   :  { %6701 = vmatprep.subr.bf16.mxu1 %v7125_v0 }
 0xc42   :  { %6195 = vmatmul.mubr.f32.vlgmr.msra.gmra.mrb[4].mxu1 %v2855_v20 }
 0xc43   :  { %6703 = vmatpush3.bf16.msra.mxu1 %v7260_v61  ;;  %6271 = vmatprep.mubr.msk.f32.mxu1 %vm7126_vm0, %v7127_v1 }
 0xc44   :  { %6704 = vmatprep.subr.bf16.mxu1 %v7125_v0 }
 0xc47   :  { %6706 = vmatpush3.bf16.msra.mxu1 %v7269_v62 }
 0xc48   :  { %6707 = vmatprep.subr.bf16.mxu1 %v7125_v0 }
 0xd15   :  { %v3267_v25 = vpop.f32.mrb[4].mxu1 }
 0xd16   :  { %v3272_v26 = vrot.slane %v3267_v25, 4  ;;  %v3273_v27 = vrot.slane %v3267_v25, 5  ;;  %v6196_v28 = vpop.f32.mrb[5].mxu1 }
 0xd18   :  { %v3276_v29 = vadd.f32 %v7327_v14, %v3272_v26  ;;  %v3277_v30 = vadd.f32 %v7324_v11, %v3273_v27 }
 0xd1a   :  { %6985 = vtanh.f32 %v3276_v29  ;;  %v5522_v33 = vmul.f32 -1.442695, %v3276_v29  ;;  %v5523_v34 = vmul.f32 -1.442695, %v3277_v30 }
 0xd1b   :  { %6987 = vtanh.f32 %v3277_v30 }
 0xd1c   :  { %6989 = vpow2.f32 %v5522_v33 }
 0xd1d   :  { %6991 = vpow2.f32 %v5523_v34 }
 0xd24   :  { %v6986_v31 = vpop.eup %6985 }
 0xd25   :  { %v6988_v32 = vpop.eup %6987  ;;  %3302 = vrot.lane.b32.xlu0 %v6986_v31, %s7128_s1 }
 0xd26   :  { %3304 = vrot.lane.b32.xlu1 %v6988_v32, %s7128_s1  ;;  %v6990_v35 = vpop.eup %6989 }
 0xd27   :  { %v6992_v36 = vpop.eup %6991  ;;  %v3284_v37 = vadd.f32 1.0, %v6990_v35 }
 0xd28   :  { %v3285_v38 = vadd.f32 1.0, %v6992_v36 }
 0xd29   :  { %6993 = vrcp.f32 %v3284_v37 }
 0xd2a   :  { %6995 = vrcp.f32 %v3285_v38 }
 0xd33   :  { %v6994_v39 = vpop.eup %6993 }
 0xd34   :  { %v6996_v41 = vpop.eup %6995  ;;  %v3298_v47 = vmul.f32 %v6994_v39, %v3294_v45 }
 0xd35   :  { %v3299_v48 = vmul.f32 %v6996_v41, %v3295_v46 }
 0xd97   :  { %v3303_v40 = vpop.permute.xlu0 %3302 }
 0xd98   :  { %v3305_v42 = vpop.permute.xlu1 %3304  ;;  %v3308_v43 = vmul.f32 %v6994_v39, %v3303_v40 }
 0xd99   :  { %v3309_v44 = vmul.f32 %v6996_v41, %v3305_v42 }
 0xd9a   :  { %3312 = vrot.lane.b32.xlu0 %v3308_v43, %s7129_s6 }
 0xd9b   :  { %3314 = vrot.lane.b32.xlu1 %v3309_v44, %s7129_s6 }
 0xe0c   :  { %v3313_v49 = vpop.permute.xlu0 %3312 }
 0xe0d   :  { %v3315_v50 = vpop.permute.xlu1 %3314  ;;  %v7554_v51 = vadd.f32 %v3313_v49, %v3298_v47 }
 0xe0e   :  { %v7556_v52 = vadd.f32 %v3315_v50, %v3299_v48 }
 0xe0f   :  { %6997 = vtanh.f32 %v7554_v51  ;;  %v3849_v37 = vrot.slane %v7554_v51, 7 }
 0xe10   :  { %6999 = vtanh.f32 %v7556_v52  ;;  %v3850_v38 = vrot.slane %v7556_v52, 7 }
 0xe19   :  { %v6998_v54 = vpop.eup %6997 }
 0xe1a   :  { %v7000_v55 = vpop.eup %6999  ;;  %3324 = vrot.lane.b32.xlu0 %v6998_v54, %s7128_s1 }
 0xe1b   :  { %3326 = vrot.lane.b32.xlu1 %v7000_v55, %s7128_s1 }
 0xe8c   :  { %v3325_v56 = vpop.permute.xlu0 %3324 }
 0xe8d   :  { %v3327_v60 = vpop.permute.xlu1 %3326  ;;  %v3330_v3 = vmul.f32 %v6994_v39, %v3325_v56 }
 0xe8e   :  { %v3331_v4 = vmul.f32 %v6996_v41, %v3327_v60 }
 0xe8f   :  { %v3334_v5 = vrot.slane %v3330_v3, 4 }
 0xe90   :  { %v3335_v6 = vrot.slane %v3331_v4, 3 }
 0xe92   :  { %v3336_v7 = vsel %vm1117_vm3, %v3335_v6, %v3334_v5 }
 0xe93   :  { %3337 = vrot.lane.b32.xlu0 %v3336_v7, %s7129_s6 }
 0xf05   :  { %v3338_v8 = vpop.permute.xlu0 %3337 }
 0xf06   :  { %v3339_v9 = vsel %vm571_vm4, %v3338_v8, 0 }
 0xf07   :  { %v3410_v10 = vand.u32 4294901760, %v3339_v9 }
 0xf09   :  { %v3411_v12 = vsub.f32 %v3339_v9, %v3410_v10 }
 0xf0b   :  { %v3412_v13 = vand.u32 4294901760, %v3411_v12 }
 0xf0d   :  { %v3413_v15 = vsub.f32 %v3411_v12, %v3412_v13 }
 0xf0f   :  { %v3414_v16 = vand.u32 4294901760, %v3413_v15 }
 0xf11   :  { %6206 = vmatmul.mubr.f32.vlgmr.msra.gmra.mrb[8].mxu0 %v3414_v16 }
 0xf12   :  { %6673 = vmatpush3.bf16.msra.mxu0 %v7232_v53  ;;  %6216 = vmatprep.mubr.msk.f32.mxu0 %vm7126_vm0, %v7127_v1 }
 0xf13   :  { %6674 = vmatprep.subr.bf16.mxu0 %v7125_v0 }
 0xf16   :  { %6676 = vmatpush3.bf16.msra.mxu0 %v7237_v57 }
 0xf17   :  { %6677 = vmatprep.subr.bf16.mxu0 %v7125_v0 }
 0xf19   :  { %6217 = vmatmul.mubr.f32.vlgmr.msra.gmra.mrb[8].mxu0 %v3410_v10 }
 0xf1a   :  { %6679 = vmatpush3.bf16.msra.mxu0 %v7242_v58  ;;  %6227 = vmatprep.mubr.msk.f32.mxu0 %vm7126_vm0, %v7127_v1 }
 0xf1b   :  { %6680 = vmatprep.subr.bf16.mxu0 %v7125_v0 }
 0xf1e   :  { %6682 = vmatpush3.bf16.msra.mxu0 %v7251_v59 }
 0xf1f   :  { %6683 = vmatprep.subr.bf16.mxu0 %v7125_v0 }
 0xf21   :  { %6228 = vmatmul.mubr.f32.vlgmr.msra.gmra.mrb[8].mxu0 %v3411_v12 }
 0xf22   :  { %6685 = vmatpush3.bf16.msra.mxu0 %v7260_v61  ;;  %6238 = vmatprep.mubr.msk.f32.mxu0 %vm7126_vm0, %v7127_v1 }
 0xf23   :  { %6686 = vmatprep.subr.bf16.mxu0 %v7125_v0 }
 0xf26   :  { %6688 = vmatpush3.bf16.msra.mxu0 %v7269_v62 }
 0xf27   :  { %6689 = vmatprep.subr.bf16.mxu0 %v7125_v0 }
 0xf29   :  { %6239 = vmatmul.mubr.f32.vlgmr.msra.gmra.mrb[8].mxu0 %v3412_v13 }
 0xf2a   :  { %6691 = vmatpush3.bf16.msra.mxu0 %v7278_v63  ;;  %6249 = vmatprep.mubr.msk.f32.mxu0 %vm7126_vm0, %v7127_v1 }
 0xf2b   :  { %6692 = vmatprep.subr.bf16.mxu0 %v7125_v0 }
 0xf2e   :  { %6694 = vmatpush3.bf16.msra.mxu0 %v7285_v2 }
 0xf2f   :  { %6695 = vmatprep.subr.bf16.mxu0 %v7125_v0 }
 0xf31   :  { %6250 = vmatmul.mubr.f32.vlgmr.msra.gmra.mrb[8].mxu0 %v3410_v10 }
 0xf32   :  { %6697 = vmatpush3.bf16.msra.mxu0 %v7260_v61  ;;  %6260 = vmatprep.mubr.msk.f32.mxu0 %vm7126_vm0, %v7127_v1 }
 0xf33   :  { %6698 = vmatprep.subr.bf16.mxu0 %v7125_v0 }
 0xf36   :  { %6700 = vmatpush3.bf16.msra.mxu0 %v7269_v62 }
 0xf37   :  { %6737 = vmatprep.subr.bf16.mxu0 %v7125_v0 }
 0xf39   :  { %6261 = vmatmul.mubr.f32.vlgmr.msra.gmra.mrb[8].mxu0 %v3410_v10 }
 0xf3a   :  { %6739 = vmatpush3.bf16.msra.mxu0 %v7260_v61  ;;  %6337 = vmatprep.mubr.msk.f32.mxu0 %vm7126_vm0, %v7127_v1 }
 0xf3b   :  { %6740 = vmatprep.subr.bf16.mxu0 %v7125_v0 }
 0xf3e   :  { %6742 = vmatpush3.bf16.msra.mxu0 %v7269_v62 }
 0xf3f   :  { %6743 = vmatprep.subr.bf16.mxu0 %v7125_v0 }
0x100c   :  { %v3822_v17 = vpop.f32.mrb[8].mxu0 }
0x100d   :  { %v3827_v18 = vrot.slane %v3822_v17, 3  ;;  %v3828_v19 = vrot.slane %v3822_v17, 4  ;;  %v6262_v20 = vpop.f32.mrb[9].mxu0 }
0x100f   :  { %v3831_v21 = vadd.f32 %v7327_v14, %v3827_v18  ;;  %v3832_v22 = vadd.f32 %v7324_v11, %v3828_v19 }
0x1011   :  { %7001 = vtanh.f32 %v3831_v21  ;;  %v5524_v25 = vmul.f32 -1.442695, %v3831_v21  ;;  %v5525_v26 = vmul.f32 -1.442695, %v3832_v22 }
0x1012   :  { %7003 = vtanh.f32 %v3832_v22 }
0x1013   :  { %7005 = vpow2.f32 %v5524_v25 }
0x1014   :  { %7007 = vpow2.f32 %v5525_v26 }
0x101b   :  { %v7002_v23 = vpop.eup %7001 }
0x101c   :  { %v7004_v24 = vpop.eup %7003  ;;  %3857 = vrot.lane.b32.xlu1 %v7002_v23, %s7128_s1 }
0x101d   :  { %3859 = vrot.lane.b32.xlu0 %v7004_v24, %s7128_s1  ;;  %v7006_v27 = vpop.eup %7005 }
0x101e   :  { %v7008_v28 = vpop.eup %7007  ;;  %v3839_v29 = vadd.f32 1.0, %v7006_v27 }
0x101f   :  { %v3840_v30 = vadd.f32 1.0, %v7008_v28 }
0x1020   :  { %7009 = vrcp.f32 %v3839_v29 }
0x1021   :  { %7011 = vrcp.f32 %v3840_v30 }
0x102a   :  { %v7010_v31 = vpop.eup %7009 }
0x102b   :  { %v7012_v33 = vpop.eup %7011  ;;  %v3853_v39 = vmul.f32 %v7010_v31, %v3849_v37 }
0x102c   :  { %v3854_v40 = vmul.f32 %v7012_v33, %v3850_v38 }
0x108e   :  { %v3858_v32 = vpop.permute.xlu1 %3857 }
0x108f   :  { %v3860_v34 = vpop.permute.xlu0 %3859  ;;  %v3863_v35 = vmul.f32 %v7010_v31, %v3858_v32 }
0x1090   :  { %v3864_v36 = vmul.f32 %v7012_v33, %v3860_v34 }
0x1091   :  { %3867 = vrot.lane.b32.xlu1 %v3863_v35, %s7129_s6 }
0x1092   :  { %3869 = vrot.lane.b32.xlu0 %v3864_v36, %s7129_s6 }
0x1103   :  { %v3868_v41 = vpop.permute.xlu1 %3867 }
0x1104   :  { %v3870_v42 = vpop.permute.xlu0 %3869  ;;  %v7609_v43 = vadd.f32 %v3868_v41, %v3853_v39 }
0x1105   :  { %v7611_v44 = vadd.f32 %v3870_v42, %v3854_v40 }
0x1106   :  { %7013 = vtanh.f32 %v7609_v43  ;;  %v4404_v29 = vrot.slane %v7609_v43, 7 }
0x1107   :  { %7015 = vtanh.f32 %v7611_v44  ;;  %v4405_v30 = vrot.slane %v7611_v44, 7 }
0x1110   :  { %v7014_v45 = vpop.eup %7013 }
0x1111   :  { %v7016_v46 = vpop.eup %7015  ;;  %3879 = vrot.lane.b32.xlu1 %v7014_v45, %s7128_s1 }
0x1112   :  { %3881 = vrot.lane.b32.xlu0 %v7016_v46, %s7128_s1 }
0x1183   :  { %v3880_v47 = vpop.permute.xlu1 %3879 }
0x1184   :  { %v3882_v48 = vpop.permute.xlu0 %3881  ;;  %v3885_v49 = vmul.f32 %v7010_v31, %v3880_v47 }
0x1185   :  { %v3886_v50 = vmul.f32 %v7012_v33, %v3882_v48 }
0x1186   :  { %v3889_v51 = vrot.slane %v3885_v49, 5 }
0x1187   :  { %v3890_v52 = vrot.slane %v3886_v50, 4 }
0x1189   :  { %v3891_v54 = vsel %vm1117_vm3, %v3890_v52, %v3889_v51 }
0x118a   :  { %3892 = vrot.lane.b32.xlu1 %v3891_v54, %s7129_s6 }
0x11fc   :  { %v3893_v55 = vpop.permute.xlu1 %3892 }
0x11fd   :  { %v3894_v56 = vsel %vm571_vm4, %v3893_v55, 0 }
0x11fe   :  { %v3965_v60 = vand.u32 4294901760, %v3894_v56 }
0x1200   :  { %v3966_v3 = vsub.f32 %v3894_v56, %v3965_v60 }
0x1202   :  { %v3967_v4 = vand.u32 4294901760, %v3966_v3 }
0x1204   :  { %v3968_v5 = vsub.f32 %v3966_v3, %v3967_v4 }
0x1206   :  { %v3969_v6 = vand.u32 4294901760, %v3968_v5 }
0x1208   :  { %6272 = vmatmul.mubr.f32.vlgmr.msra.gmra.mrb[6].mxu1 %v3969_v6 }
0x1209   :  { %6709 = vmatpush3.bf16.msra.mxu1 %v7232_v53  ;;  %6282 = vmatprep.mubr.msk.f32.mxu1 %vm7126_vm0, %v7127_v1 }
0x120a   :  { %6710 = vmatprep.subr.bf16.mxu1 %v7125_v0 }
0x120d   :  { %6712 = vmatpush3.bf16.msra.mxu1 %v7237_v57 }
0x120e   :  { %6713 = vmatprep.subr.bf16.mxu1 %v7125_v0 }
0x1210   :  { %6283 = vmatmul.mubr.f32.vlgmr.msra.gmra.mrb[6].mxu1 %v3965_v60 }
0x1211   :  { %6715 = vmatpush3.bf16.msra.mxu1 %v7242_v58  ;;  %6293 = vmatprep.mubr.msk.f32.mxu1 %vm7126_vm0, %v7127_v1 }
0x1212   :  { %6716 = vmatprep.subr.bf16.mxu1 %v7125_v0 }
0x1215   :  { %6718 = vmatpush3.bf16.msra.mxu1 %v7251_v59 }
0x1216   :  { %6719 = vmatprep.subr.bf16.mxu1 %v7125_v0 }
0x1218   :  { %6294 = vmatmul.mubr.f32.vlgmr.msra.gmra.mrb[6].mxu1 %v3966_v3 }
0x1219   :  { %6721 = vmatpush3.bf16.msra.mxu1 %v7260_v61  ;;  %6304 = vmatprep.mubr.msk.f32.mxu1 %vm7126_vm0, %v7127_v1 }
0x121a   :  { %6722 = vmatprep.subr.bf16.mxu1 %v7125_v0 }
0x121d   :  { %6724 = vmatpush3.bf16.msra.mxu1 %v7269_v62 }
0x121e   :  { %6725 = vmatprep.subr.bf16.mxu1 %v7125_v0 }
0x1220   :  { %6305 = vmatmul.mubr.f32.vlgmr.msra.gmra.mrb[6].mxu1 %v3967_v4 }
0x1221   :  { %6727 = vmatpush3.bf16.msra.mxu1 %v7278_v63  ;;  %6315 = vmatprep.mubr.msk.f32.mxu1 %vm7126_vm0, %v7127_v1 }
0x1222   :  { %6728 = vmatprep.subr.bf16.mxu1 %v7125_v0 }
0x1225   :  { %6730 = vmatpush3.bf16.msra.mxu1 %v7285_v2 }
0x1226   :  { %6731 = vmatprep.subr.bf16.mxu1 %v7125_v0 }
0x1228   :  { %6316 = vmatmul.mubr.f32.vlgmr.msra.gmra.mrb[6].mxu1 %v3965_v60 }
0x1229   :  { %6733 = vmatpush3.bf16.msra.mxu1 %v7260_v61  ;;  %6326 = vmatprep.mubr.msk.f32.mxu1 %vm7126_vm0, %v7127_v1 }
0x122a   :  { %6734 = vmatprep.subr.bf16.mxu1 %v7125_v0 }
0x122d   :  { %6736 = vmatpush3.bf16.msra.mxu1 %v7269_v62 }
0x122e   :  { %6773 = vmatprep.subr.bf16.mxu1 %v7125_v0 }
0x1230   :  { %6327 = vmatmul.mubr.f32.vlgmr.msra.gmra.mrb[6].mxu1 %v3965_v60 }
0x1231   :  { %6403 = vmatprep.mubr.msk.f32.mxu1 %vm7126_vm0, %v7127_v1 }
0x1303   :  { %v4377_v7 = vpop.f32.mrb[6].mxu1 }
0x1304   :  { %v4382_v8 = vrot.slane %v4377_v7, 2  ;;  %v4383_v9 = vrot.slane %v4377_v7, 3  ;;  %v6328_v10 = vpop.f32.mrb[7].mxu1 }
0x1306   :  { %v4386_v12 = vadd.f32 %v7327_v14, %v4382_v8  ;;  %v4387_v13 = vadd.f32 %v7324_v11, %v4383_v9 }
0x1308   :  { %7017 = vtanh.f32 %v4386_v12  ;;  %v5526_v17 = vmul.f32 -1.442695, %v4386_v12  ;;  %v5527_v18 = vmul.f32 -1.442695, %v4387_v13 }
0x1309   :  { %7019 = vtanh.f32 %v4387_v13 }
0x130a   :  { %7021 = vpow2.f32 %v5526_v17 }
0x130b   :  { %7023 = vpow2.f32 %v5527_v18 }
0x1312   :  { %v7018_v15 = vpop.eup %7017 }
0x1313   :  { %v7020_v16 = vpop.eup %7019  ;;  %4412 = vrot.lane.b32.xlu0 %v7018_v15, %s7128_s1 }
0x1314   :  { %4414 = vrot.lane.b32.xlu1 %v7020_v16, %s7128_s1  ;;  %v7022_v19 = vpop.eup %7021 }
0x1315   :  { %v7024_v20 = vpop.eup %7023  ;;  %v4394_v21 = vadd.f32 1.0, %v7022_v19 }
0x1316   :  { %v4395_v22 = vadd.f32 1.0, %v7024_v20 }
0x1317   :  { %7025 = vrcp.f32 %v4394_v21  ;;  %v49_v21 = vld [vmem:[#allocation5 + $0x38] sm:$0xff] }
0x1318   :  { %7027 = vrcp.f32 %v4395_v22  ;;  %v50_v22 = vld [vmem:[#allocation5 + $0x40] sm:$0xff] }
0x1321   :  { %v7026_v23 = vpop.eup %7025 }
0x1322   :  { %v7028_v25 = vpop.eup %7027  ;;  %v4408_v31 = vmul.f32 %v7026_v23, %v4404_v29  ;;  %v52_v29 = vld [vmem:[#allocation5 + $0x50] sm:$0xff] }
0x1323   :  { %v4409_v32 = vmul.f32 %v7028_v25, %v4405_v30 }
0x1385   :  { %v4413_v24 = vpop.permute.xlu0 %4412 }
0x1386   :  { %v4415_v26 = vpop.permute.xlu1 %4414  ;;  %v4418_v27 = vmul.f32 %v7026_v23, %v4413_v24  ;;  %v5014_v24 = vand.u32 4294901760, %v50_v22 }
0x1387   :  { %v4419_v28 = vmul.f32 %v7028_v25, %v4415_v26 }
0x1388   :  { %4422 = vrot.lane.b32.xlu0 %v4418_v27, %s7129_s6  ;;  %v5098_v27 = vsub.f32 %v50_v22, %v5014_v24 }
0x1389   :  { %4424 = vrot.lane.b32.xlu1 %v4419_v28, %s7129_s6  ;;  %v51_v28 = vld [vmem:[#allocation5 + $0x48] sm:$0xff] }
0x138a   :  { %v5017_v30 = vand.u32 4294901760, %v51_v28 }
0x13fa   :  { %v4423_v33 = vpop.permute.xlu0 %4422 }
0x13fb   :  { %v4425_v34 = vpop.permute.xlu1 %4424  ;;  %v7660_v35 = vadd.f32 %v4423_v33, %v4408_v31  ;;  %v5020_v31 = vand.u32 4294901760, %v52_v29  ;;  %v5099_v33 = vand.u32 4294901760, %v5098_v27 }
0x13fc   :  { %v7662_v36 = vadd.f32 %v4425_v34, %v4409_v32 }
0x13fd   :  { %7029 = vtanh.f32 %v7660_v35  ;;  %v4959_v9 = vrot.slane %v7660_v35, 7  ;;  %v6777_v35 = vpack.c.bf16 %v5020_v31, %v5017_v30 }
0x13fe   :  { %7031 = vtanh.f32 %v7662_v36  ;;  %v4960_v10 = vrot.slane %v7662_v36, 7  ;;  %v5105_v36 = vsub.f32 %v51_v28, %v5017_v30 }
0x1407   :  { %v7030_v37 = vpop.eup %7029 }
0x1408   :  { %v7032_v38 = vpop.eup %7031  ;;  %4434 = vrot.lane.b32.xlu0 %v7030_v37, %s7128_s1  ;;  %v5112_v37 = vsub.f32 %v52_v29, %v5020_v31 }
0x1409   :  { %4436 = vrot.lane.b32.xlu1 %v7032_v38, %s7128_s1 }
0x147a   :  { %v4435_v39 = vpop.permute.xlu0 %4434 }
0x147b   :  { %v4437_v40 = vpop.permute.xlu1 %4436  ;;  %v4440_v41 = vmul.f32 %v7026_v23, %v4435_v39  ;;  %v5011_v23 = vand.u32 4294901760, %v49_v21 }
0x147c   :  { %v4441_v42 = vmul.f32 %v7028_v25, %v4437_v40 }
0x147d   :  { %v4444_v43 = vrot.slane %v4440_v41, 6  ;;  %v7710_v25 = vpack.c.bf16 %v5014_v24, %v5011_v23  ;;  %v5091_v26 = vsub.f32 %v49_v21, %v5011_v23  ;;  %v5100_v41 = vsub.f32 %v5098_v27, %v5099_v33 }
0x147e   :  { %v4445_v44 = vrot.slane %v4441_v42, 5 }
0x147f   :  { %6775 = vmatpush3.bf16.msra.mxu1 %v7710_v25  ;;  %v5092_v32 = vand.u32 4294901760, %v5091_v26 }
0x1480   :  { %v4446_v45 = vsel %vm1117_vm3, %v4445_v44, %v4444_v43  ;;  %6776 = vmatprep.subr.bf16.mxu1 %v7125_v0  ;;  %v5106_v44 = vand.u32 4294901760, %v5105_v36 }
0x1481   :  { %4447 = vrot.lane.b32.xlu0 %v4446_v45, %s7129_s6  ;;  %v5093_v38 = vsub.f32 %v5091_v26, %v5092_v32  ;;  %v5113_v45 = vand.u32 4294901760, %v5112_v37 }
0x1483   :  { %6778 = vmatpush3.bf16.msra.mxu1 %v6777_v35  ;;  %v5094_v43 = vand.u32 4294901760, %v5093_v38 }
0x1484   :  { %6779 = vmatprep.subr.bf16.mxu1 %v7125_v0 }
0x14f3   :  { %v4448_v46 = vpop.permute.xlu0 %4447 }
0x14f4   :  { %v4449_v47 = vsel %vm571_vm4, %v4448_v46, 0 }
0x14f5   :  { %v4520_v48 = vand.u32 4294901760, %v4449_v47 }
0x14f7   :  { %v4521_v49 = vsub.f32 %v4449_v47, %v4520_v48  ;;  %v5101_v47 = vand.u32 4294901760, %v5100_v41 }
0x14f9   :  { %v4522_v50 = vand.u32 4294901760, %v4521_v49 }
0x14fb   :  { %v4523_v51 = vsub.f32 %v4521_v49, %v4522_v50 }
0x14fd   :  { %v4524_v52 = vand.u32 4294901760, %v4523_v51  ;;  %v6780_v51 = vpack.c.bf16 %v5101_v47, %v5094_v43 }
0x14ff   :  { %6338 = vmatmul.mubr.f32.vlgmr.msra.gmra.mrb[10].mxu0 %v4524_v52 }
0x1500   :  { %6745 = vmatpush3.bf16.msra.mxu0 %v7232_v53  ;;  %6348 = vmatprep.mubr.msk.f32.mxu0 %vm7126_vm0, %v7127_v1 }
0x1501   :  { %6746 = vmatprep.subr.bf16.mxu0 %v7125_v0 }
0x1504   :  { %6748 = vmatpush3.bf16.msra.mxu0 %v7237_v57 }
0x1505   :  { %6749 = vmatprep.subr.bf16.mxu0 %v7125_v0 }
0x1507   :  { %6349 = vmatmul.mubr.f32.vlgmr.msra.gmra.mrb[10].mxu0 %v4520_v48 }
0x1508   :  { %6751 = vmatpush3.bf16.msra.mxu0 %v7242_v58  ;;  %6359 = vmatprep.mubr.msk.f32.mxu0 %vm7126_vm0, %v7127_v1 }
0x1509   :  { %6752 = vmatprep.subr.bf16.mxu0 %v7125_v0 }
0x150c   :  { %6754 = vmatpush3.bf16.msra.mxu0 %v7251_v59 }
0x150d   :  { %6755 = vmatprep.subr.bf16.mxu0 %v7125_v0 }
0x150f   :  { %6360 = vmatmul.mubr.f32.vlgmr.msra.gmra.mrb[10].mxu0 %v4521_v49  ;;  %v5107_v49 = vsub.f32 %v5105_v36, %v5106_v44 }
0x1510   :  { %6757 = vmatpush3.bf16.msra.mxu0 %v7260_v61  ;;  %6370 = vmatprep.mubr.msk.f32.mxu0 %vm7126_vm0, %v7127_v1 }
0x1511   :  { %6758 = vmatprep.subr.bf16.mxu0 %v7125_v0 }
0x1514   :  { %6760 = vmatpush3.bf16.msra.mxu0 %v7269_v62 }
0x1515   :  { %6761 = vmatprep.subr.bf16.mxu0 %v7125_v0 }
0x1517   :  { %6371 = vmatmul.mubr.f32.vlgmr.msra.gmra.mrb[10].mxu0 %v4522_v50  ;;  %v5114_v50 = vsub.f32 %v5112_v37, %v5113_v45 }
0x1518   :  { %6763 = vmatpush3.bf16.msra.mxu0 %v7278_v63  ;;  %6381 = vmatprep.mubr.msk.f32.mxu0 %vm7126_vm0, %v7127_v1 }
0x1519   :  { %6764 = vmatprep.subr.bf16.mxu0 %v7125_v0 }
0x151c   :  { %6766 = vmatpush3.bf16.msra.mxu0 %v7285_v2 }
0x151d   :  { %6767 = vmatprep.subr.bf16.mxu0 %v7125_v0 }
0x151f   :  { %6382 = vmatmul.mubr.f32.vlgmr.msra.gmra.mrb[10].mxu0 %v4520_v48 }
0x1520   :  { %6769 = vmatpush3.bf16.msra.mxu0 %v7260_v61  ;;  %6392 = vmatprep.mubr.msk.f32.mxu0 %vm7126_vm0, %v7127_v1 }
0x1521   :  { %6770 = vmatprep.subr.bf16.mxu0 %v7125_v0 }
0x1524   :  { %6772 = vmatpush3.bf16.msra.mxu0 %v7269_v62 }
0x1527   :  { %6393 = vmatmul.mubr.f32.vlgmr.msra.gmra.mrb[10].mxu0 %v4520_v48 }
0x15fa   :  { %v4932_v53 = vpop.f32.mrb[10].mxu0 }
0x15fb   :  { %v4937_v57 = vrot.slane %v4932_v53, 1  ;;  %v4938_v58 = vrot.slane %v4932_v53, 2  ;;  %v6394_v59 = vpop.f32.mrb[11].mxu0  ;;  %v5108_v53 = vand.u32 4294901760, %v5107_v49 }
0x15fc   :  { %v6786_v59 = vpack.c.bf16 %v5098_v27, %v5091_v26 }
0x15fd   :  { %v4941_v63 = vadd.f32 %v7327_v14, %v4937_v57  ;;  %v4942_v2 = vadd.f32 %v7324_v11, %v4938_v58  ;;  %v5115_v57 = vand.u32 4294901760, %v5114_v50 }
0x15ff   :  { %7033 = vtanh.f32 %v4941_v63  ;;  %v5528_v55 = vmul.f32 -1.442695, %v4941_v63  ;;  %v5529_v56 = vmul.f32 -1.442695, %v4942_v2  ;;  %v6783_v58 = vpack.c.bf16 %v5115_v57, %v5108_v53 }
0x1600   :  { %7035 = vtanh.f32 %v4942_v2  ;;  %v6789_v63 = vpack.c.bf16 %v5112_v37, %v5105_v36  ;;  %v6798_v2 = vpack.c.bf16 %v5099_v33, %v5092_v32 }
0x1601   :  { %7037 = vpow2.f32 %v5528_v55 }
0x1602   :  { %7039 = vpow2.f32 %v5529_v56 }
0x1609   :  { %v7034_v54 = vpop.eup %7033 }
0x160a   :  { %v7036_v61 = vpop.eup %7035  ;;  %4967 = vrot.lane.b32.xlu1 %v7034_v54, %s7128_s1  ;;  %v6801_v54 = vpack.c.bf16 %v5113_v45, %v5106_v44 }
0x160b   :  { %4969 = vrot.lane.b32.xlu0 %v7036_v61, %s7128_s1  ;;  %v7038_v62 = vpop.eup %7037 }
0x160c   :  { %v7040_v60 = vpop.eup %7039  ;;  %v4949_v3 = vadd.f32 1.0, %v7038_v62 }
0x160d   :  { %v4950_v4 = vadd.f32 1.0, %v7040_v60 }
0x160e   :  { %7041 = vrcp.f32 %v4949_v3 }
0x160f   :  { %7043 = vrcp.f32 %v4950_v4 }
0x1618   :  { %v7042_v14 = vpop.eup %7041 }
0x1619   :  { %v7044_v5 = vpop.eup %7043  ;;  %v4963_v12 = vmul.f32 %v7042_v14, %v4959_v9 }
0x161a   :  { %v4964_v13 = vmul.f32 %v7044_v5, %v4960_v10 }
0x167c   :  { %v4968_v11 = vpop.permute.xlu1 %4967 }
0x167d   :  { %v4970_v6 = vpop.permute.xlu0 %4969  ;;  %v4973_v7 = vmul.f32 %v7042_v14, %v4968_v11 }
0x167e   :  { %v4974_v8 = vmul.f32 %v7044_v5, %v4970_v6 }
0x167f   :  { %4977 = vrot.lane.b32.xlu1 %v4973_v7, %s7129_s6 }
0x1680   :  { %4979 = vrot.lane.b32.xlu0 %v4974_v8, %s7129_s6 }
0x16f1   :  { %v4978_v15 = vpop.permute.xlu1 %4977 }
0x16f2   :  { %v4980_v16 = vpop.permute.xlu0 %4979  ;;  %v4983_v17 = vadd.f32 %v4978_v15, %v4963_v12 }
0x16f3   :  { %v4984_v18 = vadd.f32 %v4980_v16, %v4964_v13 }
0x16f4   :  { %7045 = vtanh.f32 %v4983_v17 }
0x16f5   :  { %7047 = vtanh.f32 %v4984_v18 }
0x16fe   :  { %v7046_v19 = vpop.eup %7045 }
0x16ff   :  { %v7048_v20 = vpop.eup %7047  ;;  %4989 = vrot.lane.b32.xlu1 %v7046_v19, %s7128_s1 }
0x1700   :  { %4991 = vrot.lane.b32.xlu0 %v7048_v20, %s7128_s1 }
0x1771   :  { %v4990_v34 = vpop.permute.xlu1 %4989 }
0x1772   :  { %v4992_v39 = vpop.permute.xlu0 %4991  ;;  %v4995_v40 = vmul.f32 %v7042_v14, %v4990_v34  ;;  %v5530_v14 = vld [vmem:[#allocation5 + $0x58] ss:$0 sm:$0xff] }
0x1773   :  { %v4996_v42 = vmul.f32 %v7044_v5, %v4992_v39 }
0x1774   :  { %v5003_v46 = vrot.slane %v4995_v40, 7 }
0x1775   :  { %v5004_v48 = vrot.slane %v4996_v42, 6 }
0x1777   :  { %v5005_v52 = vsel %vm1117_vm3, %v5004_v48, %v5003_v46 }
0x1778   :  { %5006 = vrot.lane.b32.xlu1 %v5005_v52, %s7129_s6 }
0x17ea   :  { %v5007_v61 = vpop.permute.xlu1 %5006 }
0x17eb   :  { %v5008_v55 = vsel %vm571_vm4, %v5007_v61, 0 }
0x17ec   :  { %v5079_v56 = vand.u32 4294901760, %v5008_v55 }
0x17ee   :  { %v5080_v62 = vsub.f32 %v5008_v55, %v5079_v56 }
0x17f0   :  { %v5081_v60 = vand.u32 4294901760, %v5080_v62 }
0x17f2   :  { %v5082_v3 = vsub.f32 %v5080_v62, %v5081_v60 }
0x17f4   :  { %v5083_v4 = vand.u32 4294901760, %v5082_v3 }
0x17f6   :  { %6404 = vmatmul.mubr.f32.vlgmr.msra.gmra.mrb[8].mxu1 %v5083_v4 }
0x17f7   :  { %6781 = vmatpush3.bf16.msra.mxu1 %v6780_v51  ;;  %6414 = vmatprep.mubr.msk.f32.mxu1 %vm7126_vm0, %v7127_v1 }
0x17f8   :  { %6782 = vmatprep.subr.bf16.mxu1 %v7125_v0 }
0x17fb   :  { %6784 = vmatpush3.bf16.msra.mxu1 %v6783_v58 }
0x17fc   :  { %6785 = vmatprep.subr.bf16.mxu1 %v7125_v0 }
0x17fe   :  { %6415 = vmatmul.mubr.f32.vlgmr.msra.gmra.mrb[8].mxu1 %v5079_v56 }
0x17ff   :  { %6787 = vmatpush3.bf16.msra.mxu1 %v6786_v59  ;;  %6425 = vmatprep.mubr.msk.f32.mxu1 %vm7126_vm0, %v7127_v1 }
0x1800   :  { %6788 = vmatprep.subr.bf16.mxu1 %v7125_v0 }
0x1803   :  { %6790 = vmatpush3.bf16.msra.mxu1 %v6789_v63 }
0x1804   :  { %6791 = vmatprep.subr.bf16.mxu1 %v7125_v0 }
0x1806   :  { %6426 = vmatmul.mubr.f32.vlgmr.msra.gmra.mrb[8].mxu1 %v5080_v62 }
0x1807   :  { %6793 = vmatpush3.bf16.msra.mxu1 %v7710_v25  ;;  %6436 = vmatprep.mubr.msk.f32.mxu1 %vm7126_vm0, %v7127_v1 }
0x1808   :  { %6794 = vmatprep.subr.bf16.mxu1 %v7125_v0 }
0x180b   :  { %6796 = vmatpush3.bf16.msra.mxu1 %v6777_v35 }
0x180c   :  { %6797 = vmatprep.subr.bf16.mxu1 %v7125_v0 }
0x180e   :  { %6437 = vmatmul.mubr.f32.vlgmr.msra.gmra.mrb[8].mxu1 %v5081_v60 }
0x180f   :  { %6799 = vmatpush3.bf16.msra.mxu1 %v6798_v2  ;;  %6447 = vmatprep.mubr.msk.f32.mxu1 %vm7126_vm0, %v7127_v1 }
0x1810   :  { %6800 = vmatprep.subr.bf16.mxu1 %v7125_v0 }
0x1813   :  { %6802 = vmatpush3.bf16.msra.mxu1 %v6801_v54 }
0x1814   :  { %6803 = vmatprep.subr.bf16.mxu1 %v7125_v0 }
0x1816   :  { %6448 = vmatmul.mubr.f32.vlgmr.msra.gmra.mrb[8].mxu1 %v5079_v56 }
0x1817   :  { %6805 = vmatpush3.bf16.msra.mxu1 %v7710_v25  ;;  %6458 = vmatprep.mubr.msk.f32.mxu1 %vm7126_vm0, %v7127_v1 }
0x1818   :  { %6806 = vmatprep.subr.bf16.mxu1 %v7125_v0 }
0x181b   :  { %6808 = vmatpush3.bf16.msra.mxu1 %v6777_v35 }
0x181e   :  { %6459 = vmatmul.mubr.f32.vlgmr.msra.gmra.mrb[8].mxu1 %v5079_v56 }
0x18f1   :  { %v5491_v11 = vpop.f32.mrb[8].mxu1 }
0x18f2   :  { %v6812_v5 = vadd.f32 %v5530_v14, %v5491_v11  ;;  %v6460_v6 = vpop.f32.mrb[9].mxu1 }
0x18f4   :  { %5496 = vst.msk [vmem:[#allocation7] sm:$0x3] %vm5495_vm5, %v6812_v5 }
0x18f5   :  { %7104 = shalt.err (!%p7101_p6)
}
0x18f6   :  { %s7105_s12 = scalar_lea.hbm %s7753_s2, 32 }
0x18f7   :  { %p7106_p7 = scmp.ne.s32.totalorder %s7753_s2, %s7105_s12  ;;  %p7109_p8 = scmp.lt.u32.totalorder %s7105_s12, %s7753_s2 }
0x18f9   :  { %p7111_p9 = pnand %p7109_p8, %p7106_p7 }
0x18fb   :  { %7114 = shalt.err (!%p7111_p9)
}
0x18fc   :  { %5506 = dma.vmem_to_hbm [thread:$0]  %s5504_s8, 32, %s7753_s2, [#allocation4]  }
0x18fd   :  { %7119 = dma.done.wait [#allocation4], 32  }
0x18fe   :  { %7120 = vsyncadd [#allocation4], 4294967264 }
0x18ff   :  { %5510 = vsyncpa [#allocation3], 1 }
0x1900   :  { %5511 = vsyncpa [#allocation6], 1 }
0x1901   :  { %5512 = vsyncpa [#allocation4], 1 }

</bundles_post_ra>
